<compile_context>
chip_gen: v5e
topology: v5e:2x2
jax: 0.10.0
libtpu: 0.0.40
codegen_flags: <defaults>
</compile_context>

<pallas_src>
import jax
import jax.numpy as jnp
from jax import lax
from jax.experimental import pallas as pl
from jax.experimental.pallas import tpu as pltpu

BN_EPS = 1e-5
C_MID = 8           # every encoder conv has 8 output channels (spec)
N_CLASSES = 11


# ---------------------------------------------------------------------------
# In-kernel helpers (traced inside the Pallas body).
# ---------------------------------------------------------------------------
def _conv3_tap_sum(h, w_stk, keep_left):
    """k=3, s=1, p=1 conv "tap sum" over the lane-flattened batch.

    h:         (C_in, W) activations, per-sample blocks along lanes
    w_stk:     (3*C_MID, C_in) tap-major stacked weight
    keep_left: (1, W) f32 multiplier, 0.0 at every per-sample position 0
               (the x[j-1] tap reads the conv's zero padding there)
    Returns (C_MID, W): stride-1 conv output, valid at least on every even
    per-sample position (the only ones the stride-2 subsample keeps).
    """
    w_cols = h.shape[1]
    t = jnp.dot(w_stk, h, preferred_element_type=jnp.float32)     # (3*C_MID, W)
    zcol = jnp.zeros((C_MID, 1), jnp.float32)
    left = jnp.concatenate([zcol, t[0:C_MID, 0:w_cols - 1]], axis=1) * keep_left
    right = jnp.concatenate([t[2 * C_MID:3 * C_MID, 1:w_cols], zcol], axis=1)
    return left + t[C_MID:2 * C_MID, :] + right


def _bn_relu(y, gamma, beta, valid=None, count=None):
    """Training-mode BatchNorm1d (biased batch stats) folded into one per-channel
    scale/shift, then ReLU.  One-pass stats; `valid` (1, W) 0/1 row optionally
    excludes junk columns from the statistics (count = number of valid cols)."""
    if valid is None:
        cnt = y.shape[1]
        ym = y
    else:
        cnt = count
        ym = y * valid
    inv = 1.0 / cnt
    m = jnp.sum(ym, axis=1, keepdims=True) * inv
    ex2 = jnp.sum(ym * ym, axis=1, keepdims=True) * inv
    var = ex2 - m * m
    scale = gamma * lax.rsqrt(var + BN_EPS)       # rsqrt -> EUP slot
    shift = beta - m * scale
    return jnp.maximum(y * scale + shift, 0.0)


# ---------------------------------------------------------------------------
# The Pallas kernel: whole CNN_1D forward in one invocation.
# ---------------------------------------------------------------------------
def cnn1d_kernel(x_ref, msk_ref, w1_ref, w26_ref, gb_ref, s1_ref, sp_ref,
                 fcw_ref, fcb_ref, predsT_ref, featsT_ref):
    _, nlp = x_ref.shape
    k1 = w1_ref.shape[0] // C_MID
    nlv = nlp - (k1 - 1)
    hdim, n_batch = featsT_ref.shape
    n_classes = predsT_ref.shape[0]
    lp = nlp // n_batch                 # per-sample padded block (L0 + 2)
    l1 = lp - k1 + 1                    # per-sample length after conv1 (128)

    # --- conv1 (k=7,s=1,p=1): one stacked-tap matmul, taps realigned with
    #     static lane slices (the zero padding is baked into x host-side)
    t = jnp.dot(w1_ref[...], x_ref[...], preferred_element_type=jnp.float32)
    y = t[0:C_MID, 0:nlv]
    for k in range(1, k1):
        y = y + t[k * C_MID:(k + 1) * C_MID, k:k + nlv]

    # --- bn1 + relu; host-built mask excludes each sample's junk tail
    #     (lp - l1 dead columns per lp-wide block) from the batch statistics
    h = _bn_relu(y, gb_ref[:, 0:1], gb_ref[:, 5:6],
                 valid=msk_ref[0:1, :], count=n_batch * l1)

    # --- conv2 (k=3,s=2,p=1): stacked-tap matmul + one subsample/compaction
    #     matmul that also drops the per-sample junk columns
    y = _conv3_tap_sum(h, w26_ref[0:24, :], msk_ref[1:2, :])
    h = jnp.dot(y, s1_ref[...], preferred_element_type=jnp.float32)
    h = _bn_relu(h, gb_ref[:, 1:2], gb_ref[:, 6:7])

    # --- conv3..conv5: 2 matmuls each on compact power-of-two sample blocks
    l = l1 // 2
    off = 0
    for i in range(3, 6):
        blk = i - 2
        block = l
        nl_in = n_batch * l
        l = l // 2
        nl_out = n_batch * l
        col = lax.broadcasted_iota(jnp.int32, (1, nl_in), 1)
        keep = ((col & (block - 1)) != 0).astype(jnp.float32)
        y = _conv3_tap_sum(h, w26_ref[blk * 24:(blk + 1) * 24, :], keep)
        h = jnp.dot(y, sp_ref[0:nl_in, off:off + nl_out],
                    preferred_element_type=jnp.float32)
        h = _bn_relu(h, gb_ref[:, i - 1:i], gb_ref[:, 4 + i:5 + i])
        off += nl_out

    # --- conv6 (no bn/relu); its stride-2 subsample is fused with the Flatten
    #     column-pick selector Q:  g[c, j*N + n] = conv6_out[n, c, j]
    block = l
    nl_in = n_batch * l
    l = l // 2
    col = lax.broadcasted_iota(jnp.int32, (1, nl_in), 1)
    keep = ((col & (block - 1)) != 0).astype(jnp.float32)
    y = _conv3_tap_sum(h, w26_ref[4 * 24:5 * 24, :], keep)
    g = jnp.dot(y, sp_ref[0:nl_in, off:off + l * n_batch],
                preferred_element_type=jnp.float32)             # (C_MID, l*N)
    z = jnp.concatenate([g[:, j * n_batch:(j + 1) * n_batch] for j in range(l)],
                        axis=0)                                  # (C_MID*l, N)

    # --- encoder Linear(32, hidden) + classifier head, kept in (feature, N)
    #     orientation (weights packed host-side in PyTorch (out, in) layout)
    flat_dim = C_MID * l
    r = 0
    we = fcw_ref[r:r + hdim, 0:flat_dim]
    r += hdim
    c1 = fcw_ref[r:r + hdim, 0:hdim]
    r += hdim
    c2 = fcw_ref[r:r + hdim // 2, 0:hdim]
    r += hdim // 2
    c3 = fcw_ref[r:r + n_classes, 0:hdim // 2]

    featsT = jnp.dot(we, z, preferred_element_type=jnp.float32) + fcb_ref[0:hdim, 0:1]
    featsT_ref[...] = featsT
    # TODO(synk): training-mode Dropout is stochastic; applied as identity here.
    a = jnp.maximum(jnp.dot(c1, featsT, preferred_element_type=jnp.float32)
                    + fcb_ref[0:hdim, 1:2], 0.0)
    a = jnp.maximum(jnp.dot(c2, a, preferred_element_type=jnp.float32)
                    + fcb_ref[0:hdim // 2, 2:3], 0.0)
    predsT_ref[...] = (jnp.dot(c3, a, preferred_element_type=jnp.float32)
                       + fcb_ref[0:n_classes, 3:4])


# ---------------------------------------------------------------------------
# Wrapper: tiny one-time host-side reshapes / packing + pallas_call.
# ---------------------------------------------------------------------------
def _stack_conv_weight(w):
    """PyTorch Conv1d weight (C_out, C_in, K) -> tap-major (K*C_out, C_in)."""
    c_out, c_in, k = w.shape
    return jnp.transpose(w, (2, 0, 1)).reshape(k * c_out, c_in)


def _even_selector(rows, n, l_out, block_in):
    """(rows, n*l_out) 0/1 matrix: out col (sample s, pos i) <- in col
    s*block_in + 2*i (stride-2 subsample + per-sample compaction)."""
    m = jnp.arange(n * l_out)
    src = (m // l_out) * block_in + 2 * (m % l_out)
    return (jnp.arange(rows)[:, None] == src[None, :]).astype(jnp.float32)


def cnn1d_forward(x, p):
    """x: (N, C_in, L) exactly like the PyTorch module. Returns (predictions, features)."""
    n, c_in, l0 = x.shape
    k1 = p["w1"].shape[2]
    lp = l0 + 2                              # conv1 padding baked in
    l1 = lp - k1 + 1
    assert l1 == 128, "length after conv1 must be 128 so Flatten yields 32 features"
    l6 = l1 // 32                            # 4: per-sample length after conv6
    flat_dim = C_MID * l6                    # 32
    assert p["fe_w"].shape[1] == flat_dim, "Flatten must produce 32 features"
    hidden = p["fe_w"].shape[0]
    f32 = jnp.float32

    nlp = n * lp
    nlv = nlp - (k1 - 1)

    # activations: (C_in, N*(L0+2)) with conv1's zero padding baked in per sample
    xp = jnp.pad(x.astype(f32), ((0, 0), (0, 0), (1, 1)))
    x_flat = jnp.transpose(xp, (1, 0, 2)).reshape(c_in, nlp)

    # per-column masks for the non-power-of-two lp-wide sample blocks
    pos = jnp.arange(nlv) % lp
    msk = jnp.stack([(pos < l1).astype(f32),        # bn1 validity
                     (pos != 0).astype(f32)], 0)    # conv2 left-boundary keep

    w1_stk = _stack_conv_weight(p["w1"].astype(f32))
    w26 = jnp.concatenate(
        [_stack_conv_weight(p[f"w{i}"].astype(f32)) for i in range(2, 7)], axis=0)
    gb = jnp.stack([p[f"g{i}"].astype(f32) for i in range(1, 6)]
                   + [p[f"b{i}"].astype(f32) for i in range(1, 6)], axis=1)   # (8, 10)

    # subsample / compaction 0/1 selectors (built once by XLA, outside the kernel)
    s1 = _even_selector(nlv, n, l1 // 2, lp)                       # conv2
    s_rows = n * (l1 // 2)
    s2 = _even_selector(n * (l1 // 2), n, l1 // 4, l1 // 2)        # conv3
    s3 = _even_selector(n * (l1 // 4), n, l1 // 8, l1 // 4)        # conv4
    s4 = _even_selector(n * (l1 // 8), n, l1 // 16, l1 // 8)       # conv5
    l_c6 = l1 // 16                                                # 8
    cq = jnp.arange(l6 * n)
    srcq = (cq % n) * l_c6 + 2 * (cq // n)
    q = (jnp.arange(n * l_c6)[:, None] == srcq[None, :]).astype(f32)  # conv6+flatten

    def _pad_rows(a):
        return jnp.pad(a, ((0, s_rows - a.shape[0]), (0, 0)))
    sp = jnp.concatenate([s2, _pad_rows(s3), _pad_rows(s4), _pad_rows(q)], axis=1)

    # packed FC weights / biases (PyTorch (out, in) layout; encoder Linear weight
    # permuted channel-major -> position-major to match the kernel's flatten)
    fe_w_pm = jnp.transpose(p["fe_w"].astype(f32).reshape(hidden, C_MID, l6),
                            (0, 2, 1)).reshape(hidden, flat_dim)
    cw = max(flat_dim, hidden)

    def _pad_cols(a):
        return jnp.pad(a, ((0, 0), (0, cw - a.shape[1])))
    fcw = jnp.concatenate([_pad_cols(fe_w_pm),
                           _pad_cols(p["c1_w"].astype(f32)),
                           _pad_cols(p["c2_w"].astype(f32)),
                           _pad_cols(p["c3_w"].astype(f32))], axis=0)
    br = max(hidden, N_CLASSES)

    def _pad_vec(v):
        v = v.astype(f32)
        return jnp.pad(v, (0, br - v.shape[0]))
    fcb = jnp.stack([_pad_vec(p["fe_b"]), _pad_vec(p["c1_b"]),
                     _pad_vec(p["c2_b"]), _pad_vec(p["c3_b"])], axis=1)     # (br, 4)

    vmem = pl.BlockSpec(memory_space=pltpu.MemorySpace.VMEM)
    args = (x_flat, msk, w1_stk, w26, gb, s1, sp, fcw, fcb)
    predsT, featsT = pl.pallas_call(
        cnn1d_kernel,
        out_shape=(jax.ShapeDtypeStruct((N_CLASSES, n), f32),
                   jax.ShapeDtypeStruct((hidden, n), f32)),
        in_specs=[vmem] * len(args),
        out_specs=(vmem, vmem),
    )(*args)
    return predsT.T, featsT.T


# ---------------------------------------------------------------------------
# Pure-JAX reference mirroring the PyTorch forward (for the correctness check).
# ---------------------------------------------------------------------------
def reference_forward(x, p):
    hp = lax.Precision.HIGHEST

    def conv(h, w, stride):
        return lax.conv_general_dilated(
            h, w, window_strides=(stride,), padding=[(1, 1)],
            dimension_numbers=("NCH", "OIH", "NCH"), precision=hp)

    def bn(y, g, b):
        m = jnp.mean(y, axis=(0, 2), keepdims=True)
        v = jnp.mean((y - m) ** 2, axis=(0, 2), keepdims=True)
        return g.reshape(1, -1, 1) * (y - m) / jnp.sqrt(v + BN_EPS) + b.reshape(1, -1, 1)

    h = jnp.maximum(bn(conv(x, p["w1"], 1), p["g1"], p["b1"]), 0.0)
    for i in (2, 3, 4, 5):
        h = jnp.maximum(bn(conv(h, p[f"w{i}"], 2), p[f"g{i}"], p[f"b{i}"]), 0.0)
    h = conv(h, p["w6"], 2)
    flat = h.reshape(h.shape[0], -1)
    feats = jnp.dot(flat, p["fe_w"].T, precision=hp) + p["fe_b"]
    z = jnp.maximum(jnp.dot(feats, p["c1_w"].T, precision=hp) + p["c1_b"], 0.0)
    z = jnp.maximum(jnp.dot(z, p["c2_w"].T, precision=hp) + p["c2_b"], 0.0)
    preds = jnp.dot(z, p["c3_w"].T, precision=hp) + p["c3_b"]
    return preds, feats


if __name__ == "__main__":
    # Smallest shapes consistent with the module: Flatten must yield 32 = 8ch * 4,
    # so the input length must reduce to 4 after conv1 and five stride-2 convs:
    # 132 -> 128 -> 64 -> 32 -> 16 -> 8 -> 4.
    N, INPUT_DIM, L = 2, 4, 132
    HIDDEN = 32
    DROPOUT = 0.5  # TODO(synk): training-mode Dropout is stochastic; kernel and
    #               reference both evaluate it as identity (eval semantics).

    key = jax.random.PRNGKey(0)
    ks = jax.random.split(key, 25)

    def w(k, shape, scale=0.2):
        return scale * jax.random.normal(k, shape, dtype=jnp.float32)

    x = jax.random.normal(ks[0], (N, INPUT_DIM, L), dtype=jnp.float32)
    p = {
        "w1": w(ks[1], (C_MID, INPUT_DIM, 7)),
        "w2": w(ks[2], (C_MID, C_MID, 3)),
        "w3": w(ks[3], (C_MID, C_MID, 3)),
        "w4": w(ks[4], (C_MID, C_MID, 3)),
        "w5": w(ks[5], (C_MID, C_MID, 3)),
        "w6": w(ks[6], (C_MID, C_MID, 3)),
        "fe_w": w(ks[7], (HIDDEN, 32)),
        "fe_b": w(ks[8], (HIDDEN,), 0.05),
        "c1_w": w(ks[9], (HIDDEN, HIDDEN)),
        "c1_b": w(ks[10], (HIDDEN,), 0.05),
        "c2_w": w(ks[11], (HIDDEN // 2, HIDDEN)),
        "c2_b": w(ks[12], (HIDDEN // 2,), 0.05),
        "c3_w": w(ks[13], (N_CLASSES, HIDDEN // 2)),
        "c3_b": w(ks[14], (N_CLASSES,), 0.05),
    }
    for i in range(1, 6):
        p[f"g{i}"] = 1.0 + 0.1 * jax.random.normal(ks[14 + i], (C_MID,), dtype=jnp.float32)
        p[f"b{i}"] = 0.1 * jax.random.normal(ks[19 + i], (C_MID,), dtype=jnp.float32)

    preds, feats = cnn1d_forward(x, p)
    jax.block_until_ready((preds, feats))

    preds_ref, feats_ref = reference_forward(x, p)
    assert preds.shape == (N, N_CLASSES), preds.shape
    assert feats.shape == (N, HIDDEN), feats.shape
    perr = float(jnp.max(jnp.abs(preds - preds_ref)))
    ferr = float(jnp.max(jnp.abs(feats - feats_ref)))
    assert jnp.allclose(preds, preds_ref, atol=2e-3, rtol=2e-3), (perr, ferr)
    assert jnp.allclose(feats, feats_ref, atol=2e-3, rtol=2e-3), (perr, ferr)
    print("KERNEL_OK")
</pallas_src>

<mosaic_0001>
module attributes {stable_mosaic.version = 11 : i64} {
  func.func @cnn1d_kernel(%arg0: memref<4x268xf32, #tpu.memory_space<vmem>>, %arg1: memref<2x262xf32, #tpu.memory_space<vmem>>, %arg2: memref<56x4xf32, #tpu.memory_space<vmem>>, %arg3: memref<120x8xf32, #tpu.memory_space<vmem>>, %arg4: memref<8x10xf32, #tpu.memory_space<vmem>>, %arg5: memref<262x128xf32, #tpu.memory_space<vmem>>, %arg6: memref<128x120xf32, #tpu.memory_space<vmem>>, %arg7: memref<91x32xf32, #tpu.memory_space<vmem>>, %arg8: memref<32x4xf32, #tpu.memory_space<vmem>>, %arg9: memref<11x2xf32, #tpu.memory_space<vmem>>, %arg10: memref<32x2xf32, #tpu.memory_space<vmem>>) attributes {dimension_semantics = [], scalar_prefetch = 0 : i64, scratch_operands = 0 : i64, tpu.core_type = #tpu.core_type<tc>} {
    %c0 = arith.constant 0 : index
    %c0_0 = arith.constant 0 : index
    %0 = vector.load %arg2[%c0, %c0_0] : memref<56x4xf32, #tpu.memory_space<vmem>>, vector<56x4xf32>
    %c0_1 = arith.constant 0 : index
    %c0_2 = arith.constant 0 : index
    %1 = vector.load %arg0[%c0_1, %c0_2] : memref<4x268xf32, #tpu.memory_space<vmem>>, vector<4x268xf32>
    %cst = arith.constant dense<0.000000e+00> : vector<56x268xf32>
    %2 = tpu.matmul %0, %1, %cst {dimension_numbers = #tpu.dot_dimension_numbers<[1], [0], [0], [1], [0, 0, 1, 1], [], []>} : vector<56x4xf32>, vector<4x268xf32>, vector<56x268xf32> -> vector<56x268xf32>
    %3 = vector.extract_strided_slice %2 {offsets = [0, 0], sizes = [8, 262], strides = [1, 1]} : vector<56x268xf32> to vector<8x262xf32>
    %4 = vector.extract_strided_slice %2 {offsets = [8, 1], sizes = [8, 262], strides = [1, 1]} : vector<56x268xf32> to vector<8x262xf32>
    %5 = arith.addf %3, %4 : vector<8x262xf32>
    %6 = vector.extract_strided_slice %2 {offsets = [16, 2], sizes = [8, 262], strides = [1, 1]} : vector<56x268xf32> to vector<8x262xf32>
    %7 = arith.addf %5, %6 : vector<8x262xf32>
    %8 = vector.extract_strided_slice %2 {offsets = [24, 3], sizes = [8, 262], strides = [1, 1]} : vector<56x268xf32> to vector<8x262xf32>
    %9 = arith.addf %7, %8 : vector<8x262xf32>
    %10 = vector.extract_strided_slice %2 {offsets = [32, 4], sizes = [8, 262], strides = [1, 1]} : vector<56x268xf32> to vector<8x262xf32>
    %11 = arith.addf %9, %10 : vector<8x262xf32>
    %12 = vector.extract_strided_slice %2 {offsets = [40, 5], sizes = [8, 262], strides = [1, 1]} : vector<56x268xf32> to vector<8x262xf32>
    %13 = arith.addf %11, %12 : vector<8x262xf32>
    %14 = vector.extract_strided_slice %2 {offsets = [48, 6], sizes = [8, 262], strides = [1, 1]} : vector<56x268xf32> to vector<8x262xf32>
    %15 = arith.addf %13, %14 : vector<8x262xf32>
    %c0_3 = arith.constant 0 : index
    %c0_4 = arith.constant 0 : index
    %16 = vector.load %arg4[%c0_3, %c0_4] : memref<8x10xf32, #tpu.memory_space<vmem>>, vector<8x1xf32>
    %c0_5 = arith.constant 0 : index
    %c5 = arith.constant 5 : index
    %17 = vector.load %arg4[%c0_5, %c5] : memref<8x10xf32, #tpu.memory_space<vmem>>, vector<8x1xf32>
    %c0_6 = arith.constant 0 : index
    %c0_7 = arith.constant 0 : index
    %18 = vector.load %arg1[%c0_6, %c0_7] : memref<2x262xf32, #tpu.memory_space<vmem>>, vector<1x262xf32>
    %19 = vector.broadcast %18 : vector<1x262xf32> to vector<8x262xf32>
    %20 = arith.mulf %15, %19 : vector<8x262xf32>
    %cst_8 = arith.constant dense<0.000000e+00> : vector<8xf32>
    %21 = vector.multi_reduction <add>, %20, %cst_8 [1] : vector<8x262xf32> to vector<8xf32>
    %22 = vector.shape_cast %21 : vector<8xf32> to vector<8x1xf32>
    %cst_9 = arith.constant 3.906250e-03 : f32
    %23 = vector.broadcast %cst_9 : f32 to vector<8x1xf32>
    %24 = arith.mulf %22, %23 : vector<8x1xf32>
    %25 = arith.mulf %20, %20 : vector<8x262xf32>
    %cst_10 = arith.constant dense<0.000000e+00> : vector<8xf32>
    %26 = vector.multi_reduction <add>, %25, %cst_10 [1] : vector<8x262xf32> to vector<8xf32>
    %27 = vector.shape_cast %26 : vector<8xf32> to vector<8x1xf32>
    %cst_11 = arith.constant 3.906250e-03 : f32
    %28 = vector.broadcast %cst_11 : f32 to vector<8x1xf32>
    %29 = arith.mulf %27, %28 : vector<8x1xf32>
    %30 = arith.mulf %24, %24 : vector<8x1xf32>
    %31 = arith.subf %29, %30 : vector<8x1xf32>
    %cst_12 = arith.constant 9.99999974E-6 : f32
    %32 = vector.broadcast %cst_12 : f32 to vector<8x1xf32>
    %33 = arith.addf %31, %32 : vector<8x1xf32>
    %34 = math.rsqrt %33 : vector<8x1xf32>
    %35 = arith.mulf %16, %34 : vector<8x1xf32>
    %36 = arith.mulf %24, %35 : vector<8x1xf32>
    %37 = arith.subf %17, %36 : vector<8x1xf32>
    %38 = vector.broadcast %35 : vector<8x1xf32> to vector<8x262xf32>
    %39 = arith.mulf %15, %38 : vector<8x262xf32>
    %40 = vector.broadcast %37 : vector<8x1xf32> to vector<8x262xf32>
    %41 = arith.addf %39, %40 : vector<8x262xf32>
    %cst_13 = arith.constant 0.000000e+00 : f32
    %42 = vector.broadcast %cst_13 : f32 to vector<8x262xf32>
    %43 = arith.maximumf %41, %42 : vector<8x262xf32>
    %c0_14 = arith.constant 0 : index
    %c0_15 = arith.constant 0 : index
    %44 = vector.load %arg3[%c0_14, %c0_15] : memref<120x8xf32, #tpu.memory_space<vmem>>, vector<24x8xf32>
    %c1 = arith.constant 1 : index
    %c0_16 = arith.constant 0 : index
    %45 = vector.load %arg1[%c1, %c0_16] : memref<2x262xf32, #tpu.memory_space<vmem>>, vector<1x262xf32>
    %cst_17 = arith.constant dense<0.000000e+00> : vector<24x262xf32>
    %46 = tpu.matmul %44, %43, %cst_17 {dimension_numbers = #tpu.dot_dimension_numbers<[1], [0], [0], [1], [0, 0, 1, 1], [], []>} : vector<24x8xf32>, vector<8x262xf32>, vector<24x262xf32> -> vector<24x262xf32>
    %cst_18 = arith.constant 0.000000e+00 : f32
    %47 = vector.broadcast %cst_18 : f32 to vector<8x1xf32>
    %48 = vector.extract_strided_slice %46 {offsets = [0, 0], sizes = [8, 261], strides = [1, 1]} : vector<24x262xf32> to vector<8x261xf32>
    %49 = tpu.concatenate %47, %48 in 1 : vector<8x1xf32>, vector<8x261xf32> -> vector<8x262xf32>
    %50 = vector.broadcast %45 : vector<1x262xf32> to vector<8x262xf32>
    %51 = arith.mulf %49, %50 : vector<8x262xf32>
    %52 = vector.extract_strided_slice %46 {offsets = [16, 1], sizes = [8, 261], strides = [1, 1]} : vector<24x262xf32> to vector<8x261xf32>
    %53 = tpu.concatenate %52, %47 in 1 : vector<8x261xf32>, vector<8x1xf32> -> vector<8x262xf32>
    %54 = vector.extract_strided_slice %46 {offsets = [8, 0], sizes = [8, 262], strides = [1, 1]} : vector<24x262xf32> to vector<8x262xf32>
    %55 = arith.addf %51, %54 : vector<8x262xf32>
    %56 = arith.addf %55, %53 : vector<8x262xf32>
    %c0_19 = arith.constant 0 : index
    %c0_20 = arith.constant 0 : index
    %57 = vector.load %arg5[%c0_19, %c0_20] : memref<262x128xf32, #tpu.memory_space<vmem>>, vector<262x128xf32>
    %cst_21 = arith.constant dense<0.000000e+00> : vector<8x128xf32>
    %58 = tpu.matmul %56, %57, %cst_21 {dimension_numbers = #tpu.dot_dimension_numbers<[1], [0], [0], [1], [0, 0, 1, 1], [], []>} : vector<8x262xf32>, vector<262x128xf32>, vector<8x128xf32> -> vector<8x128xf32>
    %c0_22 = arith.constant 0 : index
    %c1_23 = arith.constant 1 : index
    %59 = vector.load %arg4[%c0_22, %c1_23] : memref<8x10xf32, #tpu.memory_space<vmem>>, vector<8x1xf32>
    %c0_24 = arith.constant 0 : index
    %c6 = arith.constant 6 : index
    %60 = vector.load %arg4[%c0_24, %c6] : memref<8x10xf32, #tpu.memory_space<vmem>>, vector<8x1xf32>
    %cst_25 = arith.constant dense<0.000000e+00> : vector<8xf32>
    %61 = vector.multi_reduction <add>, %58, %cst_25 [1] : vector<8x128xf32> to vector<8xf32>
    %62 = vector.shape_cast %61 : vector<8xf32> to vector<8x1xf32>
    %cst_26 = arith.constant 7.812500e-03 : f32
    %63 = vector.broadcast %cst_26 : f32 to vector<8x1xf32>
    %64 = arith.mulf %62, %63 : vector<8x1xf32>
    %65 = arith.mulf %58, %58 : vector<8x128xf32>
    %cst_27 = arith.constant dense<0.000000e+00> : vector<8xf32>
    %66 = vector.multi_reduction <add>, %65, %cst_27 [1] : vector<8x128xf32> to vector<8xf32>
    %67 = vector.shape_cast %66 : vector<8xf32> to vector<8x1xf32>
    %cst_28 = arith.constant 7.812500e-03 : f32
    %68 = vector.broadcast %cst_28 : f32 to vector<8x1xf32>
    %69 = arith.mulf %67, %68 : vector<8x1xf32>
    %70 = arith.mulf %64, %64 : vector<8x1xf32>
    %71 = arith.subf %69, %70 : vector<8x1xf32>
    %cst_29 = arith.constant 9.99999974E-6 : f32
    %72 = vector.broadcast %cst_29 : f32 to vector<8x1xf32>
    %73 = arith.addf %71, %72 : vector<8x1xf32>
    %74 = math.rsqrt %73 : vector<8x1xf32>
    %75 = arith.mulf %59, %74 : vector<8x1xf32>
    %76 = arith.mulf %64, %75 : vector<8x1xf32>
    %77 = arith.subf %60, %76 : vector<8x1xf32>
    %78 = vector.broadcast %75 : vector<8x1xf32> to vector<8x128xf32>
    %79 = arith.mulf %58, %78 : vector<8x128xf32>
    %80 = vector.broadcast %77 : vector<8x1xf32> to vector<8x128xf32>
    %81 = arith.addf %79, %80 : vector<8x128xf32>
    %cst_30 = arith.constant 0.000000e+00 : f32
    %82 = vector.broadcast %cst_30 : f32 to vector<8x128xf32>
    %83 = arith.maximumf %81, %82 : vector<8x128xf32>
    %84 = tpu.iota {dimensions = array<i32: 1>} : vector<1x128xi32>
    %c63_i32 = arith.constant 63 : i32
    %85 = vector.broadcast %c63_i32 : i32 to vector<1x128xi32>
    %86 = arith.andi %84, %85 : vector<1x128xi32>
    %c0_i32 = arith.constant 0 : i32
    %87 = vector.broadcast %c0_i32 : i32 to vector<1x128xi32>
    %88 = arith.cmpi ne, %86, %87 : vector<1x128xi32>
    %89 = arith.extui %88 : vector<1x128xi1> to vector<1x128xi32>
    %90 = arith.sitofp %89 : vector<1x128xi32> to vector<1x128xf32>
    %c24 = arith.constant 24 : index
    %c0_31 = arith.constant 0 : index
    %91 = vector.load %arg3[%c24, %c0_31] : memref<120x8xf32, #tpu.memory_space<vmem>>, vector<24x8xf32>
    %cst_32 = arith.constant dense<0.000000e+00> : vector<24x128xf32>
    %92 = tpu.matmul %91, %83, %cst_32 {dimension_numbers = #tpu.dot_dimension_numbers<[1], [0], [0], [1], [0, 0, 1, 1], [], []>} : vector<24x8xf32>, vector<8x128xf32>, vector<24x128xf32> -> vector<24x128xf32>
    %cst_33 = arith.constant 0.000000e+00 : f32
    %93 = vector.broadcast %cst_33 : f32 to vector<8x1xf32>
    %94 = vector.extract_strided_slice %92 {offsets = [0, 0], sizes = [8, 127], strides = [1, 1]} : vector<24x128xf32> to vector<8x127xf32>
    %95 = tpu.concatenate %93, %94 in 1 : vector<8x1xf32>, vector<8x127xf32> -> vector<8x128xf32>
    %96 = vector.broadcast %90 : vector<1x128xf32> to vector<8x128xf32>
    %97 = arith.mulf %95, %96 : vector<8x128xf32>
    %98 = vector.extract_strided_slice %92 {offsets = [16, 1], sizes = [8, 127], strides = [1, 1]} : vector<24x128xf32> to vector<8x127xf32>
    %99 = tpu.concatenate %98, %93 in 1 : vector<8x127xf32>, vector<8x1xf32> -> vector<8x128xf32>
    %100 = vector.extract_strided_slice %92 {offsets = [8, 0], sizes = [8, 128], strides = [1, 1]} : vector<24x128xf32> to vector<8x128xf32>
    %101 = arith.addf %97, %100 : vector<8x128xf32>
    %102 = arith.addf %101, %99 : vector<8x128xf32>
    %c0_34 = arith.constant 0 : index
    %c0_35 = arith.constant 0 : index
    %103 = vector.load %arg6[%c0_34, %c0_35] : memref<128x120xf32, #tpu.memory_space<vmem>>, vector<128x64xf32>
    %cst_36 = arith.constant dense<0.000000e+00> : vector<8x64xf32>
    %104 = tpu.matmul %102, %103, %cst_36 {dimension_numbers = #tpu.dot_dimension_numbers<[1], [0], [0], [1], [0, 0, 1, 1], [], []>} : vector<8x128xf32>, vector<128x64xf32>, vector<8x64xf32> -> vector<8x64xf32>
    %c0_37 = arith.constant 0 : index
    %c2 = arith.constant 2 : index
    %105 = vector.load %arg4[%c0_37, %c2] : memref<8x10xf32, #tpu.memory_space<vmem>>, vector<8x1xf32>
    %c0_38 = arith.constant 0 : index
    %c7 = arith.constant 7 : index
    %106 = vector.load %arg4[%c0_38, %c7] : memref<8x10xf32, #tpu.memory_space<vmem>>, vector<8x1xf32>
    %cst_39 = arith.constant dense<0.000000e+00> : vector<8xf32>
    %107 = vector.multi_reduction <add>, %104, %cst_39 [1] : vector<8x64xf32> to vector<8xf32>
    %108 = vector.shape_cast %107 : vector<8xf32> to vector<8x1xf32>
    %cst_40 = arith.constant 1.562500e-02 : f32
    %109 = vector.broadcast %cst_40 : f32 to vector<8x1xf32>
    %110 = arith.mulf %108, %109 : vector<8x1xf32>
    %111 = arith.mulf %104, %104 : vector<8x64xf32>
    %cst_41 = arith.constant dense<0.000000e+00> : vector<8xf32>
    %112 = vector.multi_reduction <add>, %111, %cst_41 [1] : vector<8x64xf32> to vector<8xf32>
    %113 = vector.shape_cast %112 : vector<8xf32> to vector<8x1xf32>
    %cst_42 = arith.constant 1.562500e-02 : f32
    %114 = vector.broadcast %cst_42 : f32 to vector<8x1xf32>
    %115 = arith.mulf %113, %114 : vector<8x1xf32>
    %116 = arith.mulf %110, %110 : vector<8x1xf32>
    %117 = arith.subf %115, %116 : vector<8x1xf32>
    %cst_43 = arith.constant 9.99999974E-6 : f32
    %118 = vector.broadcast %cst_43 : f32 to vector<8x1xf32>
    %119 = arith.addf %117, %118 : vector<8x1xf32>
    %120 = math.rsqrt %119 : vector<8x1xf32>
    %121 = arith.mulf %105, %120 : vector<8x1xf32>
    %122 = arith.mulf %110, %121 : vector<8x1xf32>
    %123 = arith.subf %106, %122 : vector<8x1xf32>
    %124 = vector.broadcast %121 : vector<8x1xf32> to vector<8x64xf32>
    %125 = arith.mulf %104, %124 : vector<8x64xf32>
    %126 = vector.broadcast %123 : vector<8x1xf32> to vector<8x64xf32>
    %127 = arith.addf %125, %126 : vector<8x64xf32>
    %cst_44 = arith.constant 0.000000e+00 : f32
    %128 = vector.broadcast %cst_44 : f32 to vector<8x64xf32>
    %129 = arith.maximumf %127, %128 : vector<8x64xf32>
    %130 = tpu.iota {dimensions = array<i32: 1>} : vector<1x64xi32>
    %c31_i32 = arith.constant 31 : i32
    %131 = vector.broadcast %c31_i32 : i32 to vector<1x64xi32>
    %132 = arith.andi %130, %131 : vector<1x64xi32>
    %c0_i32_45 = arith.constant 0 : i32
    %133 = vector.broadcast %c0_i32_45 : i32 to vector<1x64xi32>
    %134 = arith.cmpi ne, %132, %133 : vector<1x64xi32>
    %135 = arith.extui %134 : vector<1x64xi1> to vector<1x64xi32>
    %136 = arith.sitofp %135 : vector<1x64xi32> to vector<1x64xf32>
    %c48 = arith.constant 48 : index
    %c0_46 = arith.constant 0 : index
    %137 = vector.load %arg3[%c48, %c0_46] : memref<120x8xf32, #tpu.memory_space<vmem>>, vector<24x8xf32>
    %cst_47 = arith.constant dense<0.000000e+00> : vector<24x64xf32>
    %138 = tpu.matmul %137, %129, %cst_47 {dimension_numbers = #tpu.dot_dimension_numbers<[1], [0], [0], [1], [0, 0, 1, 1], [], []>} : vector<24x8xf32>, vector<8x64xf32>, vector<24x64xf32> -> vector<24x64xf32>
    %cst_48 = arith.constant 0.000000e+00 : f32
    %139 = vector.broadcast %cst_48 : f32 to vector<8x1xf32>
    %140 = vector.extract_strided_slice %138 {offsets = [0, 0], sizes = [8, 63], strides = [1, 1]} : vector<24x64xf32> to vector<8x63xf32>
    %141 = tpu.concatenate %139, %140 in 1 : vector<8x1xf32>, vector<8x63xf32> -> vector<8x64xf32>
    %142 = vector.broadcast %136 : vector<1x64xf32> to vector<8x64xf32>
    %143 = arith.mulf %141, %142 : vector<8x64xf32>
    %144 = vector.extract_strided_slice %138 {offsets = [16, 1], sizes = [8, 63], strides = [1, 1]} : vector<24x64xf32> to vector<8x63xf32>
    %145 = tpu.concatenate %144, %139 in 1 : vector<8x63xf32>, vector<8x1xf32> -> vector<8x64xf32>
    %146 = vector.extract_strided_slice %138 {offsets = [8, 0], sizes = [8, 64], strides = [1, 1]} : vector<24x64xf32> to vector<8x64xf32>
    %147 = arith.addf %143, %146 : vector<8x64xf32>
    %148 = arith.addf %147, %145 : vector<8x64xf32>
    %c0_49 = arith.constant 0 : index
    %c64 = arith.constant 64 : index
    %149 = vector.load %arg6[%c0_49, %c64] : memref<128x120xf32, #tpu.memory_space<vmem>>, vector<64x32xf32>
    %cst_50 = arith.constant dense<0.000000e+00> : vector<8x32xf32>
    %150 = tpu.matmul %148, %149, %cst_50 {dimension_numbers = #tpu.dot_dimension_numbers<[1], [0], [0], [1], [0, 0, 1, 1], [], []>} : vector<8x64xf32>, vector<64x32xf32>, vector<8x32xf32> -> vector<8x32xf32>
    %c0_51 = arith.constant 0 : index
    %c3 = arith.constant 3 : index
    %151 = vector.load %arg4[%c0_51, %c3] : memref<8x10xf32, #tpu.memory_space<vmem>>, vector<8x1xf32>
    %c0_52 = arith.constant 0 : index
    %c8 = arith.constant 8 : index
    %152 = vector.load %arg4[%c0_52, %c8] : memref<8x10xf32, #tpu.memory_space<vmem>>, vector<8x1xf32>
    %cst_53 = arith.constant dense<0.000000e+00> : vector<8xf32>
    %153 = vector.multi_reduction <add>, %150, %cst_53 [1] : vector<8x32xf32> to vector<8xf32>
    %154 = vector.shape_cast %153 : vector<8xf32> to vector<8x1xf32>
    %cst_54 = arith.constant 3.125000e-02 : f32
    %155 = vector.broadcast %cst_54 : f32 to vector<8x1xf32>
    %156 = arith.mulf %154, %155 : vector<8x1xf32>
    %157 = arith.mulf %150, %150 : vector<8x32xf32>
    %cst_55 = arith.constant dense<0.000000e+00> : vector<8xf32>
    %158 = vector.multi_reduction <add>, %157, %cst_55 [1] : vector<8x32xf32> to vector<8xf32>
    %159 = vector.shape_cast %158 : vector<8xf32> to vector<8x1xf32>
    %cst_56 = arith.constant 3.125000e-02 : f32
    %160 = vector.broadcast %cst_56 : f32 to vector<8x1xf32>
    %161 = arith.mulf %159, %160 : vector<8x1xf32>
    %162 = arith.mulf %156, %156 : vector<8x1xf32>
    %163 = arith.subf %161, %162 : vector<8x1xf32>
    %cst_57 = arith.constant 9.99999974E-6 : f32
    %164 = vector.broadcast %cst_57 : f32 to vector<8x1xf32>
    %165 = arith.addf %163, %164 : vector<8x1xf32>
    %166 = math.rsqrt %165 : vector<8x1xf32>
    %167 = arith.mulf %151, %166 : vector<8x1xf32>
    %168 = arith.mulf %156, %167 : vector<8x1xf32>
    %169 = arith.subf %152, %168 : vector<8x1xf32>
    %170 = vector.broadcast %167 : vector<8x1xf32> to vector<8x32xf32>
    %171 = arith.mulf %150, %170 : vector<8x32xf32>
    %172 = vector.broadcast %169 : vector<8x1xf32> to vector<8x32xf32>
    %173 = arith.addf %171, %172 : vector<8x32xf32>
    %cst_58 = arith.constant 0.000000e+00 : f32
    %174 = vector.broadcast %cst_58 : f32 to vector<8x32xf32>
    %175 = arith.maximumf %173, %174 : vector<8x32xf32>
    %176 = tpu.iota {dimensions = array<i32: 1>} : vector<1x32xi32>
    %c15_i32 = arith.constant 15 : i32
    %177 = vector.broadcast %c15_i32 : i32 to vector<1x32xi32>
    %178 = arith.andi %176, %177 : vector<1x32xi32>
    %c0_i32_59 = arith.constant 0 : i32
    %179 = vector.broadcast %c0_i32_59 : i32 to vector<1x32xi32>
    %180 = arith.cmpi ne, %178, %179 : vector<1x32xi32>
    %181 = arith.extui %180 : vector<1x32xi1> to vector<1x32xi32>
    %182 = arith.sitofp %181 : vector<1x32xi32> to vector<1x32xf32>
    %c72 = arith.constant 72 : index
    %c0_60 = arith.constant 0 : index
    %183 = vector.load %arg3[%c72, %c0_60] : memref<120x8xf32, #tpu.memory_space<vmem>>, vector<24x8xf32>
    %cst_61 = arith.constant dense<0.000000e+00> : vector<24x32xf32>
    %184 = tpu.matmul %183, %175, %cst_61 {dimension_numbers = #tpu.dot_dimension_numbers<[1], [0], [0], [1], [0, 0, 1, 1], [], []>} : vector<24x8xf32>, vector<8x32xf32>, vector<24x32xf32> -> vector<24x32xf32>
    %cst_62 = arith.constant 0.000000e+00 : f32
    %185 = vector.broadcast %cst_62 : f32 to vector<8x1xf32>
    %186 = vector.extract_strided_slice %184 {offsets = [0, 0], sizes = [8, 31], strides = [1, 1]} : vector<24x32xf32> to vector<8x31xf32>
    %187 = tpu.concatenate %185, %186 in 1 : vector<8x1xf32>, vector<8x31xf32> -> vector<8x32xf32>
    %188 = vector.broadcast %182 : vector<1x32xf32> to vector<8x32xf32>
    %189 = arith.mulf %187, %188 : vector<8x32xf32>
    %190 = vector.extract_strided_slice %184 {offsets = [16, 1], sizes = [8, 31], strides = [1, 1]} : vector<24x32xf32> to vector<8x31xf32>
    %191 = tpu.concatenate %190, %185 in 1 : vector<8x31xf32>, vector<8x1xf32> -> vector<8x32xf32>
    %192 = vector.extract_strided_slice %184 {offsets = [8, 0], sizes = [8, 32], strides = [1, 1]} : vector<24x32xf32> to vector<8x32xf32>
    %193 = arith.addf %189, %192 : vector<8x32xf32>
    %194 = arith.addf %193, %191 : vector<8x32xf32>
    %c0_63 = arith.constant 0 : index
    %c96 = arith.constant 96 : index
    %195 = vector.load %arg6[%c0_63, %c96] : memref<128x120xf32, #tpu.memory_space<vmem>>, vector<32x16xf32>
    %cst_64 = arith.constant dense<0.000000e+00> : vector<8x16xf32>
    %196 = tpu.matmul %194, %195, %cst_64 {dimension_numbers = #tpu.dot_dimension_numbers<[1], [0], [0], [1], [0, 0, 1, 1], [], []>} : vector<8x32xf32>, vector<32x16xf32>, vector<8x16xf32> -> vector<8x16xf32>
    %c0_65 = arith.constant 0 : index
    %c4 = arith.constant 4 : index
    %197 = vector.load %arg4[%c0_65, %c4] : memref<8x10xf32, #tpu.memory_space<vmem>>, vector<8x1xf32>
    %c0_66 = arith.constant 0 : index
    %c9 = arith.constant 9 : index
    %198 = vector.load %arg4[%c0_66, %c9] : memref<8x10xf32, #tpu.memory_space<vmem>>, vector<8x1xf32>
    %cst_67 = arith.constant dense<0.000000e+00> : vector<8xf32>
    %199 = vector.multi_reduction <add>, %196, %cst_67 [1] : vector<8x16xf32> to vector<8xf32>
    %200 = vector.shape_cast %199 : vector<8xf32> to vector<8x1xf32>
    %cst_68 = arith.constant 6.250000e-02 : f32
    %201 = vector.broadcast %cst_68 : f32 to vector<8x1xf32>
    %202 = arith.mulf %200, %201 : vector<8x1xf32>
    %203 = arith.mulf %196, %196 : vector<8x16xf32>
    %cst_69 = arith.constant dense<0.000000e+00> : vector<8xf32>
    %204 = vector.multi_reduction <add>, %203, %cst_69 [1] : vector<8x16xf32> to vector<8xf32>
    %205 = vector.shape_cast %204 : vector<8xf32> to vector<8x1xf32>
    %cst_70 = arith.constant 6.250000e-02 : f32
    %206 = vector.broadcast %cst_70 : f32 to vector<8x1xf32>
    %207 = arith.mulf %205, %206 : vector<8x1xf32>
    %208 = arith.mulf %202, %202 : vector<8x1xf32>
    %209 = arith.subf %207, %208 : vector<8x1xf32>
    %cst_71 = arith.constant 9.99999974E-6 : f32
    %210 = vector.broadcast %cst_71 : f32 to vector<8x1xf32>
    %211 = arith.addf %209, %210 : vector<8x1xf32>
    %212 = math.rsqrt %211 : vector<8x1xf32>
    %213 = arith.mulf %197, %212 : vector<8x1xf32>
    %214 = arith.mulf %202, %213 : vector<8x1xf32>
    %215 = arith.subf %198, %214 : vector<8x1xf32>
    %216 = vector.broadcast %213 : vector<8x1xf32> to vector<8x16xf32>
    %217 = arith.mulf %196, %216 : vector<8x16xf32>
    %218 = vector.broadcast %215 : vector<8x1xf32> to vector<8x16xf32>
    %219 = arith.addf %217, %218 : vector<8x16xf32>
    %cst_72 = arith.constant 0.000000e+00 : f32
    %220 = vector.broadcast %cst_72 : f32 to vector<8x16xf32>
    %221 = arith.maximumf %219, %220 : vector<8x16xf32>
    %222 = tpu.iota {dimensions = array<i32: 1>} : vector<1x16xi32>
    %c7_i32 = arith.constant 7 : i32
    %223 = vector.broadcast %c7_i32 : i32 to vector<1x16xi32>
    %224 = arith.andi %222, %223 : vector<1x16xi32>
    %c0_i32_73 = arith.constant 0 : i32
    %225 = vector.broadcast %c0_i32_73 : i32 to vector<1x16xi32>
    %226 = arith.cmpi ne, %224, %225 : vector<1x16xi32>
    %227 = arith.extui %226 : vector<1x16xi1> to vector<1x16xi32>
    %228 = arith.sitofp %227 : vector<1x16xi32> to vector<1x16xf32>
    %c96_74 = arith.constant 96 : index
    %c0_75 = arith.constant 0 : index
    %229 = vector.load %arg3[%c96_74, %c0_75] : memref<120x8xf32, #tpu.memory_space<vmem>>, vector<24x8xf32>
    %cst_76 = arith.constant dense<0.000000e+00> : vector<24x16xf32>
    %230 = tpu.matmul %229, %221, %cst_76 {dimension_numbers = #tpu.dot_dimension_numbers<[1], [0], [0], [1], [0, 0, 1, 1], [], []>} : vector<24x8xf32>, vector<8x16xf32>, vector<24x16xf32> -> vector<24x16xf32>
    %cst_77 = arith.constant 0.000000e+00 : f32
    %231 = vector.broadcast %cst_77 : f32 to vector<8x1xf32>
    %232 = vector.extract_strided_slice %230 {offsets = [0, 0], sizes = [8, 15], strides = [1, 1]} : vector<24x16xf32> to vector<8x15xf32>
    %233 = tpu.concatenate %231, %232 in 1 : vector<8x1xf32>, vector<8x15xf32> -> vector<8x16xf32>
    %234 = vector.broadcast %228 : vector<1x16xf32> to vector<8x16xf32>
    %235 = arith.mulf %233, %234 : vector<8x16xf32>
    %236 = vector.extract_strided_slice %230 {offsets = [16, 1], sizes = [8, 15], strides = [1, 1]} : vector<24x16xf32> to vector<8x15xf32>
    %237 = tpu.concatenate %236, %231 in 1 : vector<8x15xf32>, vector<8x1xf32> -> vector<8x16xf32>
    %238 = vector.extract_strided_slice %230 {offsets = [8, 0], sizes = [8, 16], strides = [1, 1]} : vector<24x16xf32> to vector<8x16xf32>
    %239 = arith.addf %235, %238 : vector<8x16xf32>
    %240 = arith.addf %239, %237 : vector<8x16xf32>
    %c0_78 = arith.constant 0 : index
    %c112 = arith.constant 112 : index
    %241 = vector.load %arg6[%c0_78, %c112] : memref<128x120xf32, #tpu.memory_space<vmem>>, vector<16x8xf32>
    %cst_79 = arith.constant dense<0.000000e+00> : vector<8x8xf32>
    %242 = tpu.matmul %240, %241, %cst_79 {dimension_numbers = #tpu.dot_dimension_numbers<[1], [0], [0], [1], [0, 0, 1, 1], [], []>} : vector<8x16xf32>, vector<16x8xf32>, vector<8x8xf32> -> vector<8x8xf32>
    %243 = vector.extract_strided_slice %242 {offsets = [0, 0], sizes = [8, 2], strides = [1, 1]} : vector<8x8xf32> to vector<8x2xf32>
    %244 = vector.extract_strided_slice %242 {offsets = [0, 2], sizes = [8, 2], strides = [1, 1]} : vector<8x8xf32> to vector<8x2xf32>
    %245 = vector.extract_strided_slice %242 {offsets = [0, 4], sizes = [8, 2], strides = [1, 1]} : vector<8x8xf32> to vector<8x2xf32>
    %246 = vector.extract_strided_slice %242 {offsets = [0, 6], sizes = [8, 2], strides = [1, 1]} : vector<8x8xf32> to vector<8x2xf32>
    %247 = tpu.concatenate %243, %244, %245, %246 in 0 : vector<8x2xf32>, vector<8x2xf32>, vector<8x2xf32>, vector<8x2xf32> -> vector<32x2xf32>
    %c0_80 = arith.constant 0 : index
    %c0_81 = arith.constant 0 : index
    %248 = vector.load %arg7[%c0_80, %c0_81] : memref<91x32xf32, #tpu.memory_space<vmem>>, vector<32x32xf32>
    %c32 = arith.constant 32 : index
    %c0_82 = arith.constant 0 : index
    %249 = vector.load %arg7[%c32, %c0_82] : memref<91x32xf32, #tpu.memory_space<vmem>>, vector<32x32xf32>
    %c64_83 = arith.constant 64 : index
    %c0_84 = arith.constant 0 : index
    %250 = vector.load %arg7[%c64_83, %c0_84] : memref<91x32xf32, #tpu.memory_space<vmem>>, vector<16x32xf32>
    %c80 = arith.constant 80 : index
    %c0_85 = arith.constant 0 : index
    %251 = vector.load %arg7[%c80, %c0_85] : memref<91x32xf32, #tpu.memory_space<vmem>>, vector<11x16xf32>
    %cst_86 = arith.constant dense<0.000000e+00> : vector<32x2xf32>
    %252 = tpu.matmul %248, %247, %cst_86 {dimension_numbers = #tpu.dot_dimension_numbers<[1], [0], [0], [1], [0, 0, 1, 1], [], []>} : vector<32x32xf32>, vector<32x2xf32>, vector<32x2xf32> -> vector<32x2xf32>
    %c0_87 = arith.constant 0 : index
    %c0_88 = arith.constant 0 : index
    %253 = vector.load %arg8[%c0_87, %c0_88] : memref<32x4xf32, #tpu.memory_space<vmem>>, vector<32x1xf32>
    %254 = vector.broadcast %253 : vector<32x1xf32> to vector<32x2xf32>
    %255 = arith.addf %252, %254 : vector<32x2xf32>
    %c0_89 = arith.constant 0 : index
    %c0_90 = arith.constant 0 : index
    %256 = vector.load %arg10[%c0_89, %c0_90] : memref<32x2xf32, #tpu.memory_space<vmem>>, vector<32x2xf32>
    tpu.vector_store %arg10[%c0_89, %c0_90], %255 {strides = array<i32>} : memref<32x2xf32, #tpu.memory_space<vmem>>, vector<32x2xf32>,
    %cst_91 = arith.constant dense<0.000000e+00> : vector<32x2xf32>
    %257 = tpu.matmul %249, %255, %cst_91 {dimension_numbers = #tpu.dot_dimension_numbers<[1], [0], [0], [1], [0, 0, 1, 1], [], []>} : vector<32x32xf32>, vector<32x2xf32>, vector<32x2xf32> -> vector<32x2xf32>
    %c0_92 = arith.constant 0 : index
    %c1_93 = arith.constant 1 : index
    %258 = vector.load %arg8[%c0_92, %c1_93] : memref<32x4xf32, #tpu.memory_space<vmem>>, vector<32x1xf32>
    %259 = vector.broadcast %258 : vector<32x1xf32> to vector<32x2xf32>
    %260 = arith.addf %257, %259 : vector<32x2xf32>
    %cst_94 = arith.constant 0.000000e+00 : f32
    %261 = vector.broadcast %cst_94 : f32 to vector<32x2xf32>
    %262 = arith.maximumf %260, %261 : vector<32x2xf32>
    %cst_95 = arith.constant dense<0.000000e+00> : vector<16x2xf32>
    %263 = tpu.matmul %250, %262, %cst_95 {dimension_numbers = #tpu.dot_dimension_numbers<[1], [0], [0], [1], [0, 0, 1, 1], [], []>} : vector<16x32xf32>, vector<32x2xf32>, vector<16x2xf32> -> vector<16x2xf32>
    %c0_96 = arith.constant 0 : index
    %c2_97 = arith.constant 2 : index
    %264 = vector.load %arg8[%c0_96, %c2_97] : memref<32x4xf32, #tpu.memory_space<vmem>>, vector<16x1xf32>
    %265 = vector.broadcast %264 : vector<16x1xf32> to vector<16x2xf32>
    %266 = arith.addf %263, %265 : vector<16x2xf32>
    %cst_98 = arith.constant 0.000000e+00 : f32
    %267 = vector.broadcast %cst_98 : f32 to vector<16x2xf32>
    %268 = arith.maximumf %266, %267 : vector<16x2xf32>
    %cst_99 = arith.constant dense<0.000000e+00> : vector<11x2xf32>
    %269 = tpu.matmul %251, %268, %cst_99 {dimension_numbers = #tpu.dot_dimension_numbers<[1], [0], [0], [1], [0, 0, 1, 1], [], []>} : vector<11x16xf32>, vector<16x2xf32>, vector<11x2xf32> -> vector<11x2xf32>
    %c0_100 = arith.constant 0 : index
    %c3_101 = arith.constant 3 : index
    %270 = vector.load %arg8[%c0_100, %c3_101] : memref<32x4xf32, #tpu.memory_space<vmem>>, vector<11x1xf32>
    %271 = vector.broadcast %270 : vector<11x1xf32> to vector<11x2xf32>
    %272 = arith.addf %269, %271 : vector<11x2xf32>
    %c0_102 = arith.constant 0 : index
    %c0_103 = arith.constant 0 : index
    %273 = vector.load %arg9[%c0_102, %c0_103] : memref<11x2xf32, #tpu.memory_space<vmem>>, vector<11x2xf32>
    tpu.vector_store %arg9[%c0_102, %c0_103], %272 {strides = array<i32>} : memref<11x2xf32, #tpu.memory_space<vmem>>, vector<11x2xf32>,
    return
  }
}

</mosaic_0001>

<bundles_post_ra>
// kernel: tpu_custom_call.1
= control target key start
LH: loop header
LB: loop body
LE: loop exit
PB: predicated region body
PF: predicated region fallthrough
CT: control target
= control target key end

     0   :  { %vm73_vm0 = vcmask 1043456   ;;  %vm51_vm1 = vcmask 31744   ;;  %s1590_s30 = smov 127   ;;  %s1592_s11 = smov 125   ;;  %vm203_vm2 = vcmask 1039360   ;;  %vm221_vm3 = vcmask 1031168   ;;  %s2178_s0 = inlined_call_operand.vmem [shape: f32[4,268], index: 0, kind: input, shape index: {}]   ;;  %s2179_s2 = inlined_call_operand.vmem [shape: f32[56,4], index: 2, kind: input, shape index: {}]   ;;  %s2180_s1 = inlined_call_operand.vmem [shape: f32[2,262], index: 1, kind: input, shape index: {}]   ;;  %s2181_s4 = inlined_call_operand.vmem [shape: f32[8,10], index: 4, kind: input, shape index: {}]   ;;  %s2182_s3 = inlined_call_operand.vmem [shape: f32[120,8], index: 3, kind: input, shape index: {}]   ;;  %s2183_s5 = inlined_call_operand.vmem [shape: f32[262,128], index: 5, kind: input, shape index: {}]   ;;  %s2184_s6 = inlined_call_operand.vmem [shape: f32[128,120], index: 6, kind: input, shape index: {}]   ;;  %s2185_s8 = inlined_call_operand.vmem [shape: f32[32,4], index: 8, kind: input, shape index: {}]   ;;  %s2186_s7 = inlined_call_operand.vmem [shape: f32[91,32], index: 7, kind: input, shape index: {}]   ;;  %s2187_s10 = inlined_call_operand.vmem [shape: f32[32,2], index: 10, kind: output, shape index: {1}]   ;;  %s2188_s9 = inlined_call_operand.vmem [shape: f32[11,2], index: 9, kind: output, shape index: {0}]  }
   0x1   :  { %v41_v0 = vld [vmem:[%s2178_s0] sm:$0xff]  ;;  %v42_v1 = vld [vmem:[%s2178_s0 + $0x8] sm:$0xf]  ;;  %v36_v7 = vld [vmem:[%s2179_s2 + $0x10] sm:$0xff]  ;;  %s1593_s12 = smov 124   ;;  %s1594_s13 = smov 123  }
   0x2   :  { %45 = vst [vmem:[#allocation1] ss:$2 sm:$0xff] %v41_v0  ;;  %v34_v2 = vld [vmem:[%s2179_s2] sm:$0xff]  ;;  %v35_v6 = vld [vmem:[%s2179_s2 + $0x8] sm:$0xff]  ;;  %v37_v8 = vld [vmem:[%s2179_s2 + $0x18] sm:$0xff]  ;;  %s1595_s14 = smov 122  }
   0x3   :  { %47 = vst [vmem:[#allocation1 + $0x10] ss:$2 sm:$0xff] %v42_v1  ;;  %v38_v9 = vld [vmem:[%s2179_s2 + $0x20] sm:$0xff]  ;;  %v39_v10 = vld [vmem:[%s2179_s2 + $0x28] sm:$0xff]  ;;  %v40_v11 = vld [vmem:[%s2179_s2 + $0x30] sm:$0xff]  ;;  %s1591_s2 = smov 126  }
   0x4   :  { %vm239_vm4 = vcmask 1022976   ;;  %vm257_vm5 = vcmask 1014784   ;;  %v303_v62 = vld [vmem:[%s2180_s1] ss:$2 sm:$0x7]  ;;  %vm275_vm6 = vcmask 1006592  }
   0x5   :  { %vm293_vm7 = vcmask 998400   ;;  %vm315_vm8 = vcmask 48128   ;;  %s1597_s0 = smov 5   ;;  %vm374_vm12 = vcmask 64512   ;;  %s1599_s24 = smov 1   ;;  %vm546_vm13 = vcmask 1045504  }
   0x6   :  { %vm471_vm14 = vcmask 7168   ;;  %vm502_vm15 = vcmask 39936   ;;  %s1608_s16 = smov 32   ;;  %s1611_s22 = smov 16  }
   0x9   :  { %v48_v3 = vld.sshfl [vmem:[#allocation1] sm:$0xff pattern:$0x75316420]  ;;  %v49_v4 = vld.sshfl [vmem:[#allocation1 + $0x8] sm:$0xff pattern:$0x75316420] }
   0xa   :  { %1435 = vmatpush.msk.msra.mxu0 %vm73_vm0, %v48_v3  ;;  %1443 = vmatpush.msk.msra.mxu1 %vm73_vm0, %v49_v4  ;;  %v50_v5 = vld.sshfl [vmem:[#allocation1 + $0x10] sm:$0xff pattern:$0x75316420] }
   0xb   :  { %1451 = vmatpush.msk.msra.mxu2 %vm73_vm0, %v50_v5  ;;  %1436 = vmatmul.msk.f32.vlgmr.msra.gmra.mxu0 %vm51_vm1, %v34_v2  ;;  %v307_v5 = vperm.slane %v303_v62, 2 }
   0xc   :  { %1444 = vmatmul.msk.f32.vlgmr.msra.gmra.mxu1 %vm51_vm1, %v34_v2  ;;  %1452 = vmatmul.msk.f32.vlgmr.msra.gmra.mxu2 %vm51_vm1, %v34_v2 }
  0x13   :  { %1437 = vmatmul.msk.f32.gmra.mxu0 %vm51_vm1, %v35_v6 }
  0x14   :  { %1445 = vmatmul.msk.f32.gmra.mxu1 %vm51_vm1, %v35_v6  ;;  %1453 = vmatmul.msk.f32.gmra.mxu2 %vm51_vm1, %v35_v6 }
  0x1b   :  { %1438 = vmatmul.msk.f32.gmra.mxu0 %vm51_vm1, %v36_v7 }
  0x1c   :  { %1446 = vmatmul.msk.f32.gmra.mxu1 %vm51_vm1, %v36_v7  ;;  %1454 = vmatmul.msk.f32.gmra.mxu2 %vm51_vm1, %v36_v7 }
  0x23   :  { %1439 = vmatmul.msk.f32.gmra.mxu0 %vm51_vm1, %v37_v8 }
  0x24   :  { %1455 = vmatmul.msk.f32.gmra.mxu2 %vm51_vm1, %v37_v8  ;;  %1447 = vmatmul.msk.f32.gmra.mxu1 %vm51_vm1, %v37_v8 }
  0x2b   :  { %1440 = vmatmul.msk.f32.gmra.mxu0 %vm51_vm1, %v38_v9 }
  0x2c   :  { %1456 = vmatmul.msk.f32.gmra.mxu2 %vm51_vm1, %v38_v9  ;;  %1448 = vmatmul.msk.f32.gmra.mxu1 %vm51_vm1, %v38_v9 }
  0x33   :  { %1441 = vmatmul.msk.f32.gmra.mxu0 %vm51_vm1, %v39_v10 }
  0x34   :  { %1457 = vmatmul.msk.f32.gmra.mxu2 %vm51_vm1, %v39_v10  ;;  %1449 = vmatmul.msk.f32.gmra.mxu1 %vm51_vm1, %v39_v10 }
  0x3b   :  { %1442 = vmatmul.msk.f32.gmra.mxu0 %vm51_vm1, %v40_v11 }
  0x3c   :  { %1458 = vmatmul.msk.f32.gmra.mxu2 %vm51_vm1, %v40_v11  ;;  %1450 = vmatmul.msk.f32.gmra.mxu1 %vm51_vm1, %v40_v11 }
  0x88   :  { %v1715_v12 = vpop.f32.mrf.mxu0 }
  0x89   :  { %v1717_v13 = vpop.f32.mrf.mxu1 }
  0x8f   :  { %v173_v14 = vpop.f32.mrf.mxu2 }
  0x90   :  { %v100_v15 = vpop.f32.mrf.mxu0 }
  0x91   :  { %v138_v16 = vpop.f32.mrf.mxu1  ;;  %197 = vrot.lane.b32.xlu0 %v100_v15, %s1590_s30 }
  0x97   :  { %v176_v17 = vpop.f32.mrf.mxu2 }
  0x98   :  { %201 = vrot.lane.b32.xlu1 %v176_v17, %s1590_s30  ;;  %v103_v18 = vpop.f32.mrf.mxu0 }
  0x99   :  { %v141_v19 = vpop.f32.mrf.mxu1  ;;  %199 = vrot.lane.b32.xlu0 %v138_v16, %s1590_s30  ;;  %v305_v16 = vperm.slane %v303_v62, 0 }
  0x9a   :  { %217 = vrot.lane.b32.xlu2 %v141_v19, %s1591_s2 }
  0x9f   :  { %v179_v20 = vpop.f32.mrf.mxu2 }
  0xa0   :  { %215 = vrot.lane.b32.xlu1 %v103_v18, %s1591_s2  ;;  %v106_v21 = vpop.f32.mrf.mxu0 }
  0xa1   :  { %v144_v22 = vpop.f32.mrf.mxu1  ;;  %233 = vrot.lane.b32.xlu0 %v106_v21, %s1592_s11 }
  0xa2   :  { %219 = vrot.lane.b32.xlu2 %v179_v20, %s1591_s2 }
  0xa7   :  { %v182_v23 = vpop.f32.mrf.mxu2 }
  0xa8   :  { %235 = vrot.lane.b32.xlu1 %v144_v22, %s1592_s11  ;;  %v109_v24 = vpop.f32.mrf.mxu0 }
  0xa9   :  { %v147_v25 = vpop.f32.mrf.mxu1  ;;  %251 = vrot.lane.b32.xlu0 %v109_v24, %s1593_s12 }
  0xaa   :  { %237 = vrot.lane.b32.xlu2 %v182_v23, %s1592_s11 }
  0xaf   :  { %v185_v26 = vpop.f32.mrf.mxu2 }
  0xb0   :  { %253 = vrot.lane.b32.xlu1 %v147_v25, %s1593_s12  ;;  %v112_v27 = vpop.f32.mrf.mxu0 }
  0xb1   :  { %269 = vrot.lane.b32.xlu0 %v112_v27, %s1594_s13  ;;  %v150_v28 = vpop.f32.mrf.mxu1 }
  0xb2   :  { %255 = vrot.lane.b32.xlu2 %v185_v26, %s1593_s12 }
  0xb7   :  { %v188_v29 = vpop.f32.mrf.mxu2 }
  0xb8   :  { %271 = vrot.lane.b32.xlu1 %v150_v28, %s1594_s13  ;;  %v115_v30 = vpop.f32.mrf.mxu0 }
  0xb9   :  { %287 = vrot.lane.b32.xlu0 %v115_v30, %s1595_s14  ;;  %v153_v31 = vpop.f32.mrf.mxu1 }
  0xba   :  { %273 = vrot.lane.b32.xlu2 %v188_v29, %s1594_s13 }
  0xbf   :  { %v191_v32 = vpop.f32.mrf.mxu2 }
  0xc0   :  { %289 = vrot.lane.b32.xlu1 %v153_v31, %s1595_s14 }
  0xc2   :  { %291 = vrot.lane.b32.xlu2 %v191_v32, %s1595_s14 }
  0xf4   :  { %v218_v33 = vpop.permute.xlu2 %217 }
  0xfc   :  { %v220_v35 = vpop.permute.xlu2 %219 }
  0xfd   :  { %v223_v56 = vsel %vm221_vm3, %v218_v33, %v220_v35 }
 0x103   :  { %v198_v34 = vpop.permute.xlu0 %197 }
 0x104   :  { %v238_v38 = vpop.permute.xlu2 %237 }
 0x10a   :  { %v202_v36 = vpop.permute.xlu1 %201 }
 0x10b   :  { %v200_v37 = vpop.permute.xlu0 %199  ;;  %v211_v44 = vadd.f32 %v202_v36, %v173_v14  ;;  %v306_v14 = vperm.slane %v303_v62, 1 }
 0x10c   :  { %v256_v41 = vpop.permute.xlu2 %255  ;;  %v205_v48 = vsel %vm203_vm2, %v200_v37, %v202_v36  ;;  %v204_v51 = vsel %vm203_vm2, %v198_v34, %v200_v37  ;;  %v1596_v34 = vmov 0  }
 0x10d   :  { %v229_v47 = vadd.f32 %v220_v35, %v211_v44  ;;  %v210_v52 = vadd.f32 %v205_v48, %v1717_v13  ;;  %v209_v54 = vadd.f32 %v204_v51, %v1715_v12  ;;  %1524 = vset.pattern.permute.xlu2 %v1596_v34  ;;  %1571 = vset.pattern.permute.xlu0 %v1596_v34  ;;  %v1598_v51 = vmov 5  }
 0x10f   :  { %v247_v50 = vadd.f32 %v238_v38, %v229_v47  ;;  %v228_v61 = vadd.f32 %v223_v56, %v210_v52 }
 0x111   :  { %v265_v57 = vadd.f32 %v256_v41, %v247_v50 }
 0x112   :  { %v216_v39 = vpop.permute.xlu1 %215 }
 0x113   :  { %v234_v40 = vpop.permute.xlu0 %233  ;;  %v222_v53 = vsel %vm221_vm3, %v216_v39, %v218_v33 }
 0x114   :  { %v274_v45 = vpop.permute.xlu2 %273  ;;  %v227_v60 = vadd.f32 %v222_v53, %v209_v54 }
 0x115   :  { %v283_v0 = vadd.f32 %v274_v45, %v265_v57 }
 0x11a   :  { %v236_v42 = vpop.permute.xlu1 %235 }
 0x11b   :  { %v252_v43 = vpop.permute.xlu0 %251  ;;  %v241_v58 = vsel %vm239_vm4, %v236_v42, %v238_v38  ;;  %v240_v59 = vsel %vm239_vm4, %v234_v40, %v236_v42 }
 0x11c   :  { %v292_v63 = vpop.permute.xlu2 %291  ;;  %v246_v3 = vadd.f32 %v241_v58, %v228_v61  ;;  %v245_v4 = vadd.f32 %v240_v59, %v227_v60 }
 0x11d   :  { %v1738_v6 = vadd.f32 %v292_v63, %v283_v0 }
 0x11f   :  { %v313_v17 = vmul.f32 %v307_v5, %v1738_v6 }
 0x121   :  { %v323_v24 = vmul.f32 %v313_v17, %v313_v17  ;;  %v316_v28 = vsel %vm315_vm8, %v313_v17, 0.0  ;;  %v521_v17 = vld [vmem:[%s2183_s5 + $0x58] sm:$0xff] }
 0x122   :  { %v254_v46 = vpop.permute.xlu1 %253 }
 0x123   :  { %v270_v49 = vpop.permute.xlu0 %269  ;;  %v259_v1 = vsel %vm257_vm5, %v254_v46, %v256_v41  ;;  %v258_v2 = vsel %vm257_vm5, %v252_v43, %v254_v46  ;;  %v325_v31 = vsel %vm315_vm8, %v323_v24, 0.0  ;;  %v1748_v46 = vld [vmem:[%s2181_s4] sm:$0xff]  ;;  %vm743_vm5 = vcmask 523264  }
 0x124   :  { %v264_v9 = vadd.f32 %v259_v1, %v246_v3  ;;  %v263_v10 = vadd.f32 %v258_v2, %v245_v4  ;;  %v370_v2 = vld [vmem:[%s2182_s3 + $0x8] sm:$0xff]  ;;  %v371_v3 = vld [vmem:[%s2182_s3 + $0x10] sm:$0xff]  ;;  %v514_v24 = vld [vmem:[%s2183_s5 + $0x20] sm:$0xff] }
 0x12a   :  { %v272_v55 = vpop.permute.xlu1 %271 }
 0x12b   :  { %v277_v7 = vsel %vm275_vm6, %v272_v55, %v274_v45  ;;  %v276_v8 = vsel %vm275_vm6, %v270_v49, %v272_v55  ;;  %v288_v11 = vpop.permute.xlu0 %287 }
 0x12c   :  { %v282_v12 = vadd.f32 %v277_v7, %v264_v9  ;;  %v281_v13 = vadd.f32 %v276_v8, %v263_v10 }
 0x132   :  { %v290_v15 = vpop.permute.xlu1 %289 }
 0x133   :  { %v295_v18 = vsel %vm293_vm7, %v290_v15, %v292_v63  ;;  %v294_v19 = vsel %vm293_vm7, %v288_v11, %v290_v15  ;;  %v369_v63 = vld [vmem:[%s2182_s3] sm:$0xff]  ;;  %v523_v15 = vld [vmem:[%s2183_s5 + $0x68] sm:$0xff] }
 0x134   :  { %v300_v20 = vadd.f32 %v295_v18, %v282_v12  ;;  %v299_v21 = vadd.f32 %v294_v19, %v281_v13  ;;  %v525_v13 = vld [vmem:[%s2183_s5 + $0x78] sm:$0xff]  ;;  %v520_v18 = vld [vmem:[%s2183_s5 + $0x50] sm:$0xff]  ;;  %v519_v19 = vld [vmem:[%s2183_s5 + $0x48] sm:$0xff] }
 0x135   :  { %550 = vmatpush.msrb.mxu0 %v525_v13 }
 0x136   :  { %v312_v22 = vmul.f32 %v306_v14, %v300_v20  ;;  %v311_v23 = vmul.f32 %v305_v16, %v299_v21  ;;  %v524_v14 = vld [vmem:[%s2183_s5 + $0x70] sm:$0xff]  ;;  %v522_v16 = vld [vmem:[%s2183_s5 + $0x60] sm:$0xff] }
 0x137   :  { %551 = vmatpush.msrb.mxu0 %v524_v14 }
 0x138   :  { %v314_v25 = vadd.f32 %v312_v22, %v311_v23  ;;  %v321_v26 = vmul.f32 %v311_v23, %v311_v23  ;;  %v322_v27 = vmul.f32 %v312_v22, %v312_v22  ;;  %v516_v22 = vld [vmem:[%s2183_s5 + $0x30] sm:$0xff]  ;;  %v515_v23 = vld [vmem:[%s2183_s5 + $0x28] sm:$0xff] }
 0x139   :  { %552 = vmatpush.msrb.mxu0 %v523_v15 }
 0x13a   :  { %v317_v29 = vadd.f32 %v316_v28, %v314_v25  ;;  %v324_v30 = vadd.f32 %v322_v27, %v321_v26  ;;  %v513_v25 = vld [vmem:[%s2183_s5 + $0x18] sm:$0xff]  ;;  %v512_v26 = vld [vmem:[%s2183_s5 + $0x10] sm:$0xff]  ;;  %v511_v27 = vld [vmem:[%s2183_s5 + $0x8] sm:$0xff] }
 0x13b   :  { %553 = vmatpush.msrb.mxu0 %v522_v16  ;;  %v510_v28 = vld [vmem:[%s2183_s5] sm:$0xff] }
 0x13c   :  { %318 = vadd.xlane.f32.xlu0 %v317_v29  ;;  %v326_v32 = vadd.f32 %v325_v31, %v324_v30  ;;  %v542_v29 = vld [vmem:[%s2183_s5 + $0x100] sm:$0x3f]  ;;  %v541_v30 = vld [vmem:[%s2183_s5 + $0xf8] sm:$0xff]  ;;  %v540_v31 = vld [vmem:[%s2183_s5 + $0xf0] sm:$0xff] }
 0x13d   :  { %554 = vmatpush.msrb.mxu0 %v521_v17  ;;  %1469 = vmatpush.msk.msrb.mxu2 %vm546_vm13, %v542_v29  ;;  %v1600_v17 = vmov 1  }
 0x13e   :  { %327 = vadd.xlane.f32.xlu1 %v326_v32  ;;  %570 = vmatpush.msrb.mxu1 %v541_v30  ;;  %v539_v32 = vld [vmem:[%s2183_s5 + $0xe8] sm:$0xff] }
 0x13f   :  { %555 = vmatpush.msrb.mxu0 %v520_v18  ;;  %1526 = vset.pattern.permute.xlu1 %v1600_v17 }
 0x140   :  { %571 = vmatpush.msrb.mxu1 %v540_v31 }
 0x141   :  { %556 = vmatpush.msrb.mxu0 %v519_v19 }
 0x142   :  { %572 = vmatpush.msrb.mxu1 %v539_v32  ;;  %v1601_v32 = vmov 6  }
 0x1af   :  { %v319_v33 = vpop.xlane.xlu0 %318 }
 0x1b0   :  { %v320_v35 = vmul.f32 0.00390625, %v319_v33 }
 0x1b1   :  { %v328_v36 = vpop.xlane.xlu1 %327 }
 0x1b2   :  { %v330_v37 = vmul.f32 %v320_v35, %v320_v35  ;;  %v329_v38 = vmul.f32 0.00390625, %v328_v36  ;;  %v537_v36 = vld [vmem:[%s2183_s5 + $0xd8] sm:$0xff] }
 0x1b4   :  { %v331_v39 = vsub.f32 %v329_v38, %v330_v37  ;;  %v536_v37 = vld [vmem:[%s2183_s5 + $0xd0] sm:$0xff]  ;;  %v535_v38 = vld [vmem:[%s2183_s5 + $0xc8] sm:$0xff] }
 0x1b6   :  { %v332_v40 = vadd.f32 1e-05, %v331_v39 }
 0x1b8   :  { %1580 = vrsqrt.f32 %v332_v40  ;;  %vm339_vm10 = vweird.f32 %v332_v40 }
 0x1be   :  { %v1581_v41 = vpop.eup %1580 }
 0x1bf   :  { %v334_v42 = vmul.f32 %v1581_v41, %v332_v40  ;;  %vm340_vm9 = vweird.f32 %v1581_v41  ;;  %v534_v40 = vld [vmem:[%s2183_s5 + $0xc0] sm:$0xff] }
 0x1c0   :  { %vm341_vm11 = vmor %vm339_vm10, %vm340_vm9  ;;  %vm838_vm9 = vcmask 515072   ;;  %vm905_vm10 = vcmask 261120  }
 0x1c1   :  { %v335_v43 = vmul.f32 %v1581_v41, %v334_v42  ;;  %v532_v42 = vld [vmem:[%s2183_s5 + $0xb0] sm:$0xff] }
 0x1c3   :  { %v336_v44 = vmul.f32 0.5, %v335_v43  ;;  %v1459_v43 = vld [vmem:[%s2180_s1 + $0x1] ss:$2 sm:$0x7] }
 0x1c5   :  { %v337_v45 = vsub.f32 1.5, %v336_v44  ;;  %v531_v44 = vld [vmem:[%s2183_s5 + $0xa8] sm:$0xff] }
 0x1c7   :  { %v338_v47 = vmul.f32 %v1581_v41, %v337_v45  ;;  %v479_v45 = vperm.slane %v1459_v43, 0 }
 0x1c9   :  { %v342_v48 = vsel %vm341_vm11, %v1581_v41, %v338_v47  ;;  %v533_v41 = vld [vmem:[%s2183_s5 + $0xb8] sm:$0xff] }
 0x1ca   :  { %v343_v49 = vmul.f32 %v342_v48, %v1748_v46  ;;  %v530_v48 = vld [vmem:[%s2183_s5 + $0xa0] sm:$0xff] }
 0x1cc   :  { %v344_v50 = vmul.f32 %v343_v49, %v320_v35  ;;  %v538_v35 = vld [vmem:[%s2183_s5 + $0xe0] sm:$0xff] }
 0x1cd   :  { %573 = vmatpush.msrb.mxu1 %v538_v35 }
 0x1ce   :  { %346 = vrot.lane.b32.xlu2 %v344_v50, %s1597_s0  ;;  %v529_v50 = vld [vmem:[%s2183_s5 + $0x98] sm:$0xff] }
 0x1cf   :  { %574 = vmatpush.msrb.mxu1 %v537_v36 }
 0x1d1   :  { %575 = vmatpush.msrb.mxu1 %v536_v37 }
 0x1d3   :  { %576 = vmatpush.msrb.mxu1 %v535_v38 }
 0x1d5   :  { %577 = vmatpush.msrb.mxu1 %v534_v40 }
 0x1d6   :  { %352 = vperm.xlu2 %1524, %v343_v49  }
 0x1d7   :  { %578 = vmatpush.msrb.mxu1 %v533_v41  ;;  %v656_v41 = vld [vmem:[%s2182_s3 + $0x18] sm:$0xff] }
 0x1d9   :  { %579 = vmatpush.msrb.mxu1 %v532_v42  ;;  %v657_v42 = vld [vmem:[%s2182_s3 + $0x20] sm:$0xff] }
 0x1db   :  { %580 = vmatpush.msrb.mxu1 %v531_v44  ;;  %v722_v44 = vld [vmem:[%s2184_s6 + $0x78] sm:$0xff] }
 0x1dd   :  { %581 = vmatpush.msrb.mxu1 %v530_v48  ;;  %v719_v48 = vld [vmem:[%s2184_s6 + $0x60] sm:$0xff] }
 0x1de   :  { %1525 = vset.pattern.permute.xlu2 %v1598_v51 }
 0x1df   :  { %582 = vmatpush.msrb.mxu1 %v529_v50  ;;  %v717_v50 = vld [vmem:[%s2184_s6 + $0x50] sm:$0xff] }
 0x228   :  { %v347_v52 = vpop.permute.xlu2 %346 }
 0x229   :  { %v349_v53 = vsub.f32 %v1748_v46, %v347_v52  ;;  %v528_v52 = vld [vmem:[%s2183_s5 + $0x90] sm:$0xff] }
 0x22a   :  { %583 = vmatpush.msrb.mxu1 %v528_v52  ;;  %v715_v52 = vld [vmem:[%s2184_s6 + $0x40] sm:$0xff] }
 0x22b   :  { %360 = vperm.xlu2 %1525, %v349_v53  }
 0x230   :  { %v353_v54 = vpop.permute.xlu2 %352 }
 0x231   :  { %v356_v55 = vmul.f32 %v353_v54, %v300_v20  ;;  %v355_v56 = vmul.f32 %v353_v54, %v299_v21  ;;  %v357_v57 = vmul.f32 %v353_v54, %v1738_v6  ;;  %v518_v20 = vld [vmem:[%s2183_s5 + $0x40] sm:$0xff]  ;;  %v517_v21 = vld [vmem:[%s2183_s5 + $0x38] sm:$0xff] }
 0x232   :  { %557 = vmatpush.msrb.mxu0 %v518_v20 }
 0x234   :  { %558 = vmatpush.msrb.mxu0 %v517_v21 }
 0x236   :  { %559 = vmatpush.msrb.mxu0 %v516_v22 }
 0x238   :  { %560 = vmatpush.msrb.mxu0 %v515_v23 }
 0x23a   :  { %561 = vmatpush.msrb.mxu0 %v514_v24 }
 0x23c   :  { %562 = vmatpush.msrb.mxu0 %v513_v25 }
 0x23e   :  { %563 = vmatpush.msrb.mxu0 %v512_v26 }
 0x240   :  { %564 = vmatpush.msrb.mxu0 %v511_v27 }
 0x242   :  { %565 = vmatpush.msrb.mxu0 %v510_v28 }
 0x285   :  { %v361_v58 = vpop.permute.xlu2 %360 }
 0x286   :  { %v363_v59 = vadd.f32 %v361_v58, %v355_v56  ;;  %v364_v60 = vadd.f32 %v361_v58, %v356_v55  ;;  %v365_v61 = vadd.f32 %v361_v58, %v357_v57  ;;  %v527_v57 = vld [vmem:[%s2183_s5 + $0x88] sm:$0xff] }
 0x287   :  { %584 = vmatpush.msrb.mxu1 %v527_v57  ;;  %v1956_v57 = vld [vmem:[%s2184_s6 + $0x20] sm:$0xff] }
 0x288   :  { %v366_v62 = vmax.f32 %v363_v59, 0.0  ;;  %v367_v0 = vmax.f32 %v364_v60, 0.0  ;;  %v368_v1 = vmax.f32 %v365_v61, 0.0  ;;  %v526_v59 = vld [vmem:[%s2183_s5 + $0x80] sm:$0xff]  ;;  %v480_v60 = vperm.slane %v1459_v43, 1 }
 0x289   :  { %585 = vmatpush.msrb.mxu1 %v526_v59  ;;  %v481_v61 = vperm.slane %v1459_v43, 2  ;;  %v658_v43 = vld [vmem:[%s2182_s3 + $0x28] sm:$0xff] }
 0x28a   :  { %399 = vmatpush.msra.mxu3 %v366_v62 }
 0x28b   :  { %1460 = vmatmul.msk.f32.vlgmr.msra.gmra.mxu3 %vm374_vm12, %v369_v63 }
 0x28c   :  { %425 = vmatpush.msrb.mxu3 %v367_v0 }
 0x28e   :  { %451 = vmatpush.msra.mxu3 %v368_v1 }
 0x293   :  { %1461 = vmatmul.msk.f32.gmra.mxu3 %vm374_vm12, %v370_v2 }
 0x29b   :  { %1462 = vmatmul.msk.f32.gmra.mxu3 %vm374_vm12, %v371_v3 }
 0x2a3   :  { %1463 = vmatmul.msk.f32.vlgmr.msrb.gmra.mxu3 %vm374_vm12, %v369_v63 }
 0x2a4   :  { %723 = vmatpush.msrb.mxu3 %v722_v44  ;;  %v790_v44 = vld [vmem:[%s2182_s3 + $0x30] sm:$0xff] }
 0x2ab   :  { %1464 = vmatmul.msk.f32.gmra.mxu3 %vm374_vm12, %v370_v2 }
 0x2b3   :  { %1465 = vmatmul.msk.f32.gmra.mxu3 %vm374_vm12, %v371_v3 }
 0x2bb   :  { %1466 = vmatmul.msk.f32.vlgmr.msra.gmra.mxu3 %vm374_vm12, %v369_v63 }
 0x2c3   :  { %1467 = vmatmul.msk.f32.gmra.mxu3 %vm374_vm12, %v370_v2 }
 0x2cb   :  { %1468 = vmatmul.msk.f32.gmra.mxu3 %vm374_vm12, %v371_v3 }
 0x30e   :  { %v401_v4 = vpop.f32.mrf.mxu3 }
 0x30f   :  { %465 = vrot.lane.b32.xlu2 %v401_v4, %s1599_s24 }
 0x316   :  { %v1773_v5 = vpop.f32.mrf.mxu3 }
 0x31e   :  { %v407_v6 = vpop.f32.mrf.mxu3 }
 0x31f   :  { %491 = vrot.lane.b32.xlu1 %v407_v6, %s1590_s30 }
 0x326   :  { %v427_v7 = vpop.f32.mrf.mxu3 }
 0x327   :  { %467 = vrot.lane.b32.xlu2 %v427_v7, %s1599_s24 }
 0x32e   :  { %v1777_v8 = vpop.f32.mrf.mxu3 }
 0x336   :  { %v433_v9 = vpop.f32.mrf.mxu3 }
 0x33e   :  { %v453_v10 = vpop.f32.mrf.mxu3 }
 0x33f   :  { %469 = vrot.lane.b32.xlu2 %v453_v10, %s1599_s24 }
 0x346   :  { %v1780_v11 = vpop.f32.mrf.mxu3 }
 0x347   :  { %493 = vrot.lane.b32.xlu2 %v433_v9, %s1590_s30 }
 0x34e   :  { %v459_v12 = vpop.f32.mrf.mxu3 }
 0x34f   :  { %495 = vrot.lane.b32.xlu0 %v459_v12, %s1590_s30 }
 0x369   :  { %v466_v33 = vpop.permute.xlu2 %465 }
 0x36a   :  { %v477_v49 = vsel %vm471_vm14, 0.0, %v466_v33 }
 0x36b   :  { %v485_v51 = vmul.f32 %v479_v45, %v477_v49  ;;  %v721_v45 = vld [vmem:[%s2184_s6 + $0x70] sm:$0xff]  ;;  %v718_v49 = vld [vmem:[%s2184_s6 + $0x58] sm:$0xff] }
 0x36c   :  { %724 = vmatpush.msrb.mxu3 %v721_v45  ;;  %v791_v45 = vld [vmem:[%s2182_s3 + $0x38] sm:$0xff] }
 0x36d   :  { %v504_v54 = vadd.f32 %v485_v51, %v1773_v5  ;;  %v716_v51 = vld [vmem:[%s2184_s6 + $0x48] sm:$0xff] }
 0x381   :  { %v468_v39 = vpop.permute.xlu2 %467 }
 0x382   :  { %v472_v62 = vsel %vm471_vm14, %v466_v33, %v468_v39 }
 0x383   :  { %v486_v0 = vmul.f32 %v480_v60, %v472_v62  ;;  %v1964_v60 = vld [vmem:[%s2184_s6 + $0x18] sm:$0xff]  ;;  %v1976_v62 = vld [vmem:[%s2184_s6 + $0x8] sm:$0xff] }
 0x385   :  { %v505_v2 = vadd.f32 %v486_v0, %v1777_v8  ;;  %v650_v0 = vlaneseq }
 0x391   :  { %v492_v53 = vpop.permute.xlu1 %491 }
 0x399   :  { %v470_v47 = vpop.permute.xlu2 %469 }
 0x39a   :  { %v473_v63 = vsel %vm471_vm14, %v468_v39, %v470_v47  ;;  %v720_v47 = vld [vmem:[%s2184_s6 + $0x68] sm:$0xff] }
 0x39b   :  { %v487_v1 = vmul.f32 %v481_v61, %v473_v63  ;;  %725 = vmatpush.msrb.mxu3 %v720_v47  ;;  %v1970_v61 = vld [vmem:[%s2184_s6 + $0x10] sm:$0xff]  ;;  %v1982_v63 = vld [vmem:[%s2184_s6] sm:$0xff] }
 0x39c   :  { %v792_v47 = vld [vmem:[%s2182_s3 + $0x40] sm:$0xff] }
 0x39d   :  { %v506_v3 = vadd.f32 %v487_v1, %v1780_v11  ;;  %726 = vmatpush.msrb.mxu3 %v719_v48  ;;  %v1985_v1 = vand.u32 127, %v650_v0  ;;  %v2013_v48 = vpack.i.bf16 %v1970_v61, %v1964_v60 }
 0x39f   :  { %727 = vmatpush.msrb.mxu3 %v718_v49 }
 0x3a1   :  { %v494_v55 = vpop.permute.xlu2 %493  ;;  %728 = vmatpush.msrb.mxu3 %v717_v50 }
 0x3a2   :  { %v497_v56 = vsel %vm203_vm2, %v492_v53, %v494_v55  ;;  %v1938_v53 = vld [vmem:[%s2184_s6 + $0x38] sm:$0xff] }
 0x3a3   :  { %v507_v58 = vadd.f32 %v504_v54, %v497_v56  ;;  %729 = vmatpush.msrb.mxu3 %v716_v51  ;;  %v1950_v56 = vld [vmem:[%s2184_s6 + $0x28] sm:$0xff] }
 0x3a4   :  { %v1535_v49 = vpack.i.bf16 %v1956_v57, %v1950_v56 }
 0x3a5   :  { %566 = vmatmul.f32.vlgmr.msrb.gmra.mxu0 %v507_v58  ;;  %730 = vmatpush.msrb.mxu3 %v715_v52 }
 0x3a7   :  { %731 = vmatpush.msrb.mxu3 %v1938_v53 }
 0x3c1   :  { %v496_v4 = vpop.permute.xlu0 %495 }
 0x3c2   :  { %v498_v5 = vsel %vm203_vm2, %v494_v55, %v496_v4  ;;  %v503_v6 = vsel %vm502_vm15, %v496_v4, 0.0  ;;  %v1944_v55 = vld [vmem:[%s2184_s6 + $0x30] sm:$0xff]  ;;  %s1605_s6 = smov 64  }
 0x3c3   :  { %v508_v7 = vadd.f32 %v505_v2, %v498_v5  ;;  %v509_v9 = vadd.f32 %v506_v3, %v503_v6  ;;  %732 = vmatpush.msrb.mxu3 %v1944_v55  ;;  %v652_v2 = vand.u32 63, %v1985_v1  ;;  %v1602_v3 = vmov 0.0  }
 0x3c5   :  { %586 = vmatmul.f32.vlgmr.msrb.gmra.mxu1 %v508_v7  ;;  %1470 = vmatmul.msk.f32.vlgmr.msrb.gmra.mxu2 %vm315_vm8, %v509_v9  ;;  %vm653_vm4 = vcmp.ne.s32.totalorder %v652_v2, 0  ;;  %v786_v2 = vand.u32 31, %v1985_v1 }
 0x3c6   :  { %733 = vmatpush.msrb.mxu3 %v1950_v56  ;;  %v1471_v4 = vsel %vm653_vm4, 1.0, %v1602_v3 }
 0x3c7   :  { %vm787_vm8 = vcmp.ne.s32.totalorder %v786_v2, 0 }
 0x3c8   :  { %734 = vmatpush.msrb.mxu3 %v1956_v57 }
 0x3ca   :  { %735 = vmatpush.msrb.mxu3 %v1964_v60 }
 0x3cc   :  { %736 = vmatpush.msrb.mxu3 %v1970_v61 }
 0x3ce   :  { %737 = vmatpush.msrb.mxu3 %v1976_v62 }
 0x3d0   :  { %738 = vmatpush.msrb.mxu3 %v1982_v63 }
 0x422   :  { %v567_v12 = vpop.f32.mrf.mxu0 }
 0x442   :  { %v587_v10 = vpop.f32.mrf.mxu1 }
 0x443   :  { %v588_v13 = vadd.f32 %v587_v10, %v567_v12 }
 0x448   :  { %v607_v14 = vpop.f32.mrf.mxu2 }
 0x449   :  { %v608_v15 = vadd.f32 %v607_v14, %v588_v13 }
 0x44b   :  { %610 = vadd.xlane.f32.xlu2 %v608_v15  ;;  %v613_v16 = vmul.f32 %v608_v15, %v608_v15 }
 0x44d   :  { %614 = vadd.xlane.f32.xlu0 %v613_v16 }
 0x4be   :  { %v611_v8 = vpop.xlane.xlu2 %610 }
 0x4bf   :  { %v612_v11 = vmul.f32 0.0078125, %v611_v8 }
 0x4c0   :  { %v615_v18 = vpop.xlane.xlu0 %614 }
 0x4c1   :  { %v617_v19 = vmul.f32 %v612_v11, %v612_v11  ;;  %v616_v20 = vmul.f32 0.0078125, %v615_v18 }
 0x4c3   :  { %v618_v21 = vsub.f32 %v616_v20, %v617_v19 }
 0x4c5   :  { %v619_v22 = vadd.f32 1e-05, %v618_v21 }
 0x4c7   :  { %1582 = vrsqrt.f32 %v619_v22  ;;  %vm626_vm1 = vweird.f32 %v619_v22 }
 0x4cd   :  { %v1583_v23 = vpop.eup %1582 }
 0x4ce   :  { %v621_v24 = vmul.f32 %v1583_v23, %v619_v22  ;;  %vm627_vm0 = vweird.f32 %v1583_v23 }
 0x4cf   :  { %vm628_vm3 = vmor %vm626_vm1, %vm627_vm0  ;;  %vm1000_vm1 = vcmask 252928  }
 0x4d0   :  { %v622_v25 = vmul.f32 %v1583_v23, %v621_v24 }
 0x4d2   :  { %v623_v26 = vmul.f32 0.5, %v622_v25 }
 0x4d4   :  { %v624_v27 = vsub.f32 1.5, %v623_v26 }
 0x4d6   :  { %v625_v28 = vmul.f32 %v1583_v23, %v624_v27 }
 0x4d8   :  { %v629_v29 = vsel %vm628_vm3, %v1583_v23, %v625_v28  ;;  %vm1047_vm3 = vcmask 130048  }
 0x4d9   :  { %v630_v30 = vmul.f32 %v629_v29, %v1748_v46 }
 0x4db   :  { %v631_v31 = vmul.f32 %v630_v30, %v612_v11  ;;  %v1603_v11 = vmov 2  }
 0x4dc   :  { %1528 = vset.pattern.permute.xlu2 %v1603_v11 }
 0x4dd   :  { %633 = vrot.lane.b32.xlu1 %v631_v31, %s1597_s0 }
 0x4e5   :  { %639 = vperm.xlu1 %1526, %v630_v30  }
 0x4ed   :  { %1527 = vset.pattern.permute.xlu1 %v1601_v32 }
 0x54f   :  { %v634_v33 = vpop.permute.xlu1 %633 }
 0x550   :  { %v636_v35 = vsub.f32 %v1748_v46, %v634_v33 }
 0x552   :  { %645 = vperm.xlu1 %1527, %v636_v35   ;;  %v1604_v35 = vmov 7  }
 0x557   :  { %v640_v36 = vpop.permute.xlu1 %639 }
 0x558   :  { %v642_v37 = vmul.f32 %v640_v36, %v608_v15 }
 0x5c4   :  { %v646_v38 = vpop.permute.xlu1 %645 }
 0x5c5   :  { %v648_v39 = vadd.f32 %v646_v38, %v642_v37  ;;  %v1530_v38 = vpack.i.bf16 %v1944_v55, %v1938_v53 }
 0x5c7   :  { %v649_v40 = vmax.f32 %v648_v39, 0.0 }
 0x5c9   :  { %683 = vmatpush.msra.mxu0 %v649_v40 }
 0x5ca   :  { %1472 = vmatmul.msk.f32.vlgmr.msra.gmra.mxu0 %vm374_vm12, %v656_v41 }
 0x5d2   :  { %1473 = vmatmul.msk.f32.gmra.mxu0 %vm374_vm12, %v657_v42 }
 0x5da   :  { %1474 = vmatmul.msk.f32.gmra.mxu0 %vm374_vm12, %v658_v43 }
 0x647   :  { %v685_v54 = vpop.f32.mrf.mxu0 }
 0x648   :  { %695 = vrot.lane.b32.xlu1 %v685_v54, %s1599_s24  ;;  %v2021_v54 = vpack.i.bf16 %v1982_v63, %v1976_v62  ;;  %v1475_v63 = vsel %vm787_vm8, 1.0, %v1602_v3 }
 0x64f   :  { %v688_v58 = vpop.f32.mrf.mxu0 }
 0x657   :  { %v691_v59 = vpop.f32.mrf.mxu0 }
 0x658   :  { %701 = vrot.lane.b32.xlu2 %v691_v59, %s1590_s30 }
 0x6b2   :  { %v702_v6 = vpop.permute.xlu2 %701 }
 0x6b3   :  { %v704_v10 = vsel %vm203_vm2, %v702_v6, 0.0 }
 0x6ba   :  { %v696_v5 = vpop.permute.xlu1 %695 }
 0x6bb   :  { %v698_v7 = vsel %vm471_vm14, 0.0, %v696_v5 }
 0x6bc   :  { %v699_v9 = vmul.f32 %v1471_v4, %v698_v7 }
 0x6be   :  { %v705_v12 = vadd.f32 %v699_v9, %v688_v58 }
 0x6c0   :  { %v706_v13 = vadd.f32 %v705_v12, %v704_v10 }
 0x6c2   :  { %739 = vmatmul.f32.vlgmr.msrb.gmra.mxu3 %v706_v13 }
 0x745   :  { %v740_v14 = vpop.f32.mrf.mxu3 }
 0x746   :  { %v744_v15 = vsel %vm743_vm5, %v740_v14, 0.0  ;;  %v748_v16 = vmul.f32 %v740_v14, %v740_v14 }
 0x747   :  { %745 = vadd.xlane.f32.xlu1 %v744_v15 }
 0x748   :  { %v749_v8 = vsel %vm743_vm5, %v748_v16, 0.0 }
 0x749   :  { %750 = vadd.xlane.f32.xlu0 %v749_v8 }
 0x760   :  { %1541 = vrot.lane.b32.xlu1 %v2013_v48, %s1605_s6 }
 0x7ba   :  { %v746_v18 = vpop.xlane.xlu1 %745 }
 0x7bb   :  { %v747_v19 = vmul.f32 0.015625, %v746_v18 }
 0x7bc   :  { %v751_v20 = vpop.xlane.xlu0 %750 }
 0x7bd   :  { %v753_v21 = vmul.f32 %v747_v19, %v747_v19  ;;  %v752_v22 = vmul.f32 0.015625, %v751_v20  ;;  %v1606_v20 = vmov 3  }
 0x7be   :  { %1550 = vset.pattern.permute.xlu1 %v1606_v20 }
 0x7bf   :  { %v754_v23 = vsub.f32 %v752_v22, %v753_v21 }
 0x7c1   :  { %v755_v24 = vadd.f32 1e-05, %v754_v23 }
 0x7c3   :  { %1584 = vrsqrt.f32 %v755_v24  ;;  %vm762_vm6 = vweird.f32 %v755_v24 }
 0x7c9   :  { %v1585_v25 = vpop.eup %1584 }
 0x7ca   :  { %v757_v26 = vmul.f32 %v1585_v25, %v755_v24  ;;  %vm763_vm2 = vweird.f32 %v1585_v25 }
 0x7cb   :  { %vm764_vm7 = vmor %vm762_vm6, %vm763_vm2 }
 0x7cc   :  { %v758_v27 = vmul.f32 %v1585_v25, %v757_v26 }
 0x7ce   :  { %v759_v28 = vmul.f32 0.5, %v758_v27 }
 0x7d0   :  { %v760_v29 = vsub.f32 1.5, %v759_v28 }
 0x7d2   :  { %v761_v30 = vmul.f32 %v1585_v25, %v760_v29  ;;  %v1542_v60 = vpop.permute.xlu1 %1541 }
 0x7d3   :  { %v1544_v61 = vunpack.i.h.bf16 %v1542_v60  ;;  %v1543_v0 = vunpack.i.l.bf16 %v1542_v60 }
 0x7d4   :  { %v765_v31 = vsel %vm764_vm7, %v1585_v25, %v761_v30  ;;  %vm1425_vm7 = vcmask 10240  }
 0x7d5   :  { %v766_v32 = vmul.f32 %v765_v31, %v1748_v46 }
 0x7d7   :  { %775 = vperm.xlu2 %1528, %v766_v32   ;;  %v767_v33 = vmul.f32 %v766_v32, %v747_v19 }
 0x7d9   :  { %769 = vrot.lane.b32.xlu0 %v767_v33, %s1597_s0 }
 0x7df   :  { %1529 = vset.pattern.permute.xlu2 %v1604_v35 }
 0x7e1   :  { %1531 = vrot.lane.b32.xlu0 %v1530_v38, %s1605_s6 }
 0x831   :  { %v776_v39 = vpop.permute.xlu2 %775 }
 0x832   :  { %v778_v40 = vmul.f32 %v776_v39, %v740_v14 }
 0x84b   :  { %v770_v36 = vpop.permute.xlu0 %769 }
 0x84c   :  { %v772_v37 = vsub.f32 %v1748_v46, %v770_v36 }
 0x84e   :  { %781 = vperm.xlu2 %1529, %v772_v37   ;;  %v1607_v37 = vmov 8  }
 0x853   :  { %v1532_v50 = vpop.permute.xlu0 %1531 }
 0x854   :  { %v1534_v51 = vunpack.i.h.bf16 %v1532_v50  ;;  %v1533_v52 = vunpack.i.l.bf16 %v1532_v50 }
 0x856   :  { %1536 = vrot.lane.b32.xlu2 %v1535_v49, %s1605_s6  ;;  %893 = vmatpush.msra.mxu2 %v1533_v52  ;;  %v954_v49 = vld [vmem:[%s2182_s3 + $0x58] sm:$0xff] }
 0x858   :  { %894 = vmatpush.msra.mxu2 %v1534_v51 }
 0x8a8   :  { %v782_v41 = vpop.permute.xlu2 %781 }
 0x8a9   :  { %v784_v42 = vadd.f32 %v782_v41, %v778_v40 }
 0x8ab   :  { %v785_v43 = vmax.f32 %v784_v42, 0.0 }
 0x8ad   :  { %817 = vmatpush.msra.mxu1 %v785_v43 }
 0x8ae   :  { %1476 = vmatmul.msk.f32.vlgmr.msra.gmra.mxu1 %vm374_vm12, %v790_v44 }
 0x8b0   :  { %v1537_v56 = vpop.permute.xlu2 %1536 }
 0x8b1   :  { %v1539_v57 = vunpack.i.h.bf16 %v1537_v56  ;;  %v1538_v59 = vunpack.i.l.bf16 %v1537_v56  ;;  %v948_v56 = vand.u32 15, %v1985_v1 }
 0x8b3   :  { %895 = vmatpush.msra.mxu2 %v1538_v59  ;;  %vm949_vm0 = vcmp.ne.s32.totalorder %v948_v56, 0  ;;  %v1201_v56 = vld [vmem:[%s2185_s8] sm:$0xff] }
 0x8b4   :  { %v1480_v59 = vsel %vm949_vm0, 1.0, %v1602_v3 }
 0x8b5   :  { %896 = vmatpush.msra.mxu2 %v1539_v57 }
 0x8b6   :  { %1477 = vmatmul.msk.f32.gmra.mxu1 %vm374_vm12, %v791_v45  ;;  %v952_v45 = vld [vmem:[%s2182_s3 + $0x48] sm:$0xff] }
 0x8b7   :  { %897 = vmatpush.msra.mxu2 %v1543_v0 }
 0x8b9   :  { %898 = vmatpush.msra.mxu2 %v1544_v61 }
 0x8be   :  { %1478 = vmatmul.msk.f32.gmra.mxu1 %vm374_vm12, %v792_v47  ;;  %v953_v47 = vld [vmem:[%s2182_s3 + $0x50] sm:$0xff] }
 0x92b   :  { %v819_v53 = vpop.f32.mrf.mxu1 }
 0x92c   :  { %829 = vrot.lane.b32.xlu0 %v819_v53, %s1599_s24 }
 0x933   :  { %v822_v55 = vpop.f32.mrf.mxu1 }
 0x934   :  { %1546 = vrot.lane.b32.xlu0 %v2021_v54, %s1605_s6 }
 0x93b   :  { %v825_v58 = vpop.f32.mrf.mxu1 }
 0x93c   :  { %835 = vrot.lane.b32.xlu2 %v825_v58, %s1590_s30 }
 0x996   :  { %v836_v6 = vpop.permute.xlu2 %835 }
 0x997   :  { %v839_v10 = vsel %vm838_vm9, %v836_v6, 0.0 }
 0x99e   :  { %v830_v62 = vpop.permute.xlu0 %829 }
 0x99f   :  { %v832_v4 = vsel %vm471_vm14, 0.0, %v830_v62 }
 0x9a0   :  { %v833_v5 = vmul.f32 %v1475_v63, %v832_v4 }
 0x9a2   :  { %v840_v7 = vadd.f32 %v833_v5, %v822_v55 }
 0x9a4   :  { %v841_v14 = vadd.f32 %v840_v7, %v839_v10 }
 0x9a6   :  { %v1547_v9 = vpop.permute.xlu0 %1546 }
 0x9a7   :  { %v1548_v12 = vunpack.i.l.bf16 %v1547_v9  ;;  %v1549_v13 = vunpack.i.h.bf16 %v1547_v9 }
 0x9a9   :  { %899 = vmatpush.msra.mxu2 %v1548_v12 }
 0x9ab   :  { %900 = vmatpush.msra.mxu2 %v1549_v13  ;;  %v1609_v13 = vmov 4  }
 0x9ac   :  { %1479 = vmatmul.msk.f32.vlgmr.msra.gmra.mxu2 %vm743_vm5, %v841_v14  ;;  %1562 = vset.pattern.permute.xlu2 %v1609_v13 }
 0xa2f   :  { %v902_v15 = vpop.f32.mrf.mxu2 }
 0xa30   :  { %v906_v16 = vsel %vm905_vm10, %v902_v15, 0.0  ;;  %v910_v8 = vmul.f32 %v902_v15, %v902_v15 }
 0xa31   :  { %907 = vadd.xlane.f32.xlu2 %v906_v16 }
 0xa32   :  { %v911_v18 = vsel %vm905_vm10, %v910_v8, 0.0 }
 0xa33   :  { %912 = vadd.xlane.f32.xlu0 %v911_v18 }
 0xa49   :  { %1553 = vrot.lane.b32.xlu2 %v2013_v48, %s1608_s16 }
 0xaa4   :  { %v908_v19 = vpop.xlane.xlu2 %907 }
 0xaa5   :  { %v909_v21 = vmul.f32 0.03125, %v908_v19 }
 0xaa6   :  { %v913_v22 = vpop.xlane.xlu0 %912 }
 0xaa7   :  { %v915_v23 = vmul.f32 %v909_v21, %v909_v21  ;;  %v914_v24 = vmul.f32 0.03125, %v913_v22 }
 0xaa9   :  { %v916_v25 = vsub.f32 %v914_v24, %v915_v23 }
 0xaab   :  { %v917_v26 = vadd.f32 1e-05, %v916_v25 }
 0xaac   :  { %v1554_v53 = vpop.permute.xlu2 %1553 }
 0xaad   :  { %1586 = vrsqrt.f32 %v917_v26  ;;  %vm924_vm13 = vweird.f32 %v917_v26  ;;  %v1556_v55 = vunpack.i.h.bf16 %v1554_v53  ;;  %v1555_v58 = vunpack.i.l.bf16 %v1554_v53 }
 0xaaf   :  { %1039 = vmatpush.msrb.mxu0 %v1555_v58 }
 0xab1   :  { %1040 = vmatpush.msrb.mxu0 %v1556_v55 }
 0xab3   :  { %v1587_v27 = vpop.eup %1586 }
 0xab4   :  { %v919_v28 = vmul.f32 %v1587_v27, %v917_v26  ;;  %vm925_vm11 = vweird.f32 %v1587_v27 }
 0xab5   :  { %vm926_vm15 = vmor %vm924_vm13, %vm925_vm11 }
 0xab6   :  { %v920_v29 = vmul.f32 %v1587_v27, %v919_v28 }
 0xab8   :  { %v921_v30 = vmul.f32 0.5, %v920_v29 }
 0xaba   :  { %v922_v31 = vsub.f32 1.5, %v921_v30  ;;  %v1610_v30 = vmov 9  }
 0xabc   :  { %v923_v32 = vmul.f32 %v1587_v27, %v922_v31 }
 0xabe   :  { %v927_v33 = vsel %vm926_vm15, %v1587_v27, %v923_v32 }
 0xabf   :  { %v928_v35 = vmul.f32 %v927_v33, %v1748_v46 }
 0xac1   :  { %v929_v36 = vmul.f32 %v928_v35, %v909_v21 }
 0xac3   :  { %931 = vrot.lane.b32.xlu1 %v929_v36, %s1597_s0 }
 0xacb   :  { %937 = vperm.xlu1 %1550, %v928_v35  }
 0xad3   :  { %1551 = vset.pattern.permute.xlu1 %v1607_v37 }
 0xb35   :  { %v932_v38 = vpop.permute.xlu1 %931 }
 0xb36   :  { %v934_v39 = vsub.f32 %v1748_v46, %v932_v38 }
 0xb38   :  { %943 = vperm.xlu1 %1551, %v934_v39   ;;  %v1094_v39 = vld [vmem:[%s2182_s3 + $0x60] sm:$0xff] }
 0xb3d   :  { %v938_v40 = vpop.permute.xlu1 %937 }
 0xb3e   :  { %v940_v41 = vmul.f32 %v938_v40, %v902_v15  ;;  %v1095_v40 = vld [vmem:[%s2182_s3 + $0x68] sm:$0xff] }
 0xb40   :  { %1569 = vset.pattern.permute.xlu1 %v1596_v34 }
 0xbaa   :  { %v944_v42 = vpop.permute.xlu1 %943 }
 0xbab   :  { %v946_v43 = vadd.f32 %v944_v42, %v940_v41 }
 0xbad   :  { %v947_v44 = vmax.f32 %v946_v43, 0.0 }
 0xbaf   :  { %979 = vmatpush.msrb.mxu2 %v947_v44 }
 0xbb0   :  { %1481 = vmatmul.msk.f32.vlgmr.msrb.gmra.mxu2 %vm374_vm12, %v952_v45 }
 0xbb8   :  { %1482 = vmatmul.msk.f32.gmra.mxu2 %vm374_vm12, %v953_v47 }
 0xbc0   :  { %1483 = vmatmul.msk.f32.gmra.mxu2 %vm374_vm12, %v954_v49  ;;  %v1090_v49 = vand.u32 7, %v1985_v1  ;;  %v1204_v1 = vld [vmem:[%s2185_s8 + $0x18] sm:$0xff] }
 0xbc2   :  { %vm1091_vm6 = vcmp.ne.s32.totalorder %v1090_v49, 0  ;;  %v1200_v49 = vld [vmem:[%s2186_s7 + $0x58] sm:$0x7] }
 0xc33   :  { %v981_v50 = vpop.f32.mrf.mxu2 }
 0xc34   :  { %991 = vrot.lane.b32.xlu1 %v981_v50, %s1599_s24  ;;  %v1485_v50 = vsel %vm1091_vm6, 1.0, %v1602_v3 }
 0xc3b   :  { %v984_v51 = vpop.f32.mrf.mxu2 }
 0xc3c   :  { %1558 = vrot.lane.b32.xlu1 %v2021_v54, %s1608_s16 }
 0xc43   :  { %v987_v52 = vpop.f32.mrf.mxu2 }
 0xc44   :  { %997 = vrot.lane.b32.xlu0 %v987_v52, %s1590_s30 }
 0xca6   :  { %v992_v48 = vpop.permute.xlu1 %991 }
 0xca7   :  { %v994_v60 = vsel %vm471_vm14, 0.0, %v992_v48 }
 0xca8   :  { %v995_v2 = vmul.f32 %v1480_v59, %v994_v60  ;;  %v1203_v59 = vld [vmem:[%s2185_s8 + $0x10] sm:$0xff] }
 0xcaa   :  { %v1002_v62 = vadd.f32 %v995_v2, %v984_v51  ;;  %v1190_v2 = vld [vmem:[%s2186_s7 + $0x8] sm:$0xff] }
 0xcae   :  { %v1559_v57 = vpop.permute.xlu1 %1558 }
 0xcaf   :  { %v1561_v61 = vunpack.i.h.bf16 %v1559_v57  ;;  %v1560_v0 = vunpack.i.l.bf16 %v1559_v57  ;;  %v1202_v57 = vld [vmem:[%s2185_s8 + $0x8] sm:$0xff] }
 0xcb1   :  { %1041 = vmatpush.msrb.mxu0 %v1560_v0  ;;  %v1189_v0 = vld [vmem:[%s2186_s7] sm:$0xff] }
 0xcb3   :  { %1042 = vmatpush.msrb.mxu0 %v1561_v61 }
 0xcb6   :  { %v998_v63 = vpop.permute.xlu0 %997 }
 0xcb7   :  { %v1001_v4 = vsel %vm1000_vm1, %v998_v63, 0.0 }
 0xcb8   :  { %v1003_v5 = vadd.f32 %v1002_v62, %v1001_v4  ;;  %v1192_v62 = vld [vmem:[%s2186_s7 + $0x18] sm:$0xff] }
 0xcba   :  { %1484 = vmatmul.msk.f32.vlgmr.msrb.gmra.mxu0 %vm905_vm10, %v1003_v5 }
 0xd37   :  { %v1044_v6 = vpop.f32.mrf.mxu0 }
 0xd38   :  { %v1048_v7 = vsel %vm1047_vm3, %v1044_v6, 0.0  ;;  %v1052_v9 = vmul.f32 %v1044_v6, %v1044_v6 }
 0xd39   :  { %1049 = vadd.xlane.f32.xlu1 %v1048_v7 }
 0xd3a   :  { %v1053_v10 = vsel %vm1047_vm3, %v1052_v9, 0.0 }
 0xd3b   :  { %1054 = vadd.xlane.f32.xlu0 %v1053_v10 }
 0xdac   :  { %v1050_v12 = vpop.xlane.xlu1 %1049 }
 0xdad   :  { %v1051_v14 = vmul.f32 0.0625, %v1050_v12 }
 0xdae   :  { %v1055_v15 = vpop.xlane.xlu0 %1054 }
 0xdaf   :  { %v1057_v16 = vmul.f32 %v1051_v14, %v1051_v14  ;;  %v1056_v8 = vmul.f32 0.0625, %v1055_v15  ;;  %v1193_v15 = vld [vmem:[%s2186_s7 + $0x20] sm:$0xff] }
 0xdb1   :  { %v1058_v18 = vsub.f32 %v1056_v8, %v1057_v16  ;;  %v1194_v16 = vld [vmem:[%s2186_s7 + $0x28] sm:$0xff]  ;;  %v1195_v8 = vld [vmem:[%s2186_s7 + $0x30] sm:$0xff] }
 0xdb3   :  { %v1059_v19 = vadd.f32 1e-05, %v1058_v18  ;;  %v1196_v18 = vld [vmem:[%s2186_s7 + $0x38] sm:$0xff] }
 0xdb5   :  { %1588 = vrsqrt.f32 %v1059_v19  ;;  %vm1066_vm5 = vweird.f32 %v1059_v19 }
 0xdbb   :  { %v1589_v21 = vpop.eup %1588 }
 0xdbc   :  { %v1061_v22 = vmul.f32 %v1589_v21, %v1059_v19  ;;  %vm1067_vm4 = vweird.f32 %v1589_v21 }
 0xdbd   :  { %vm1068_vm2 = vmor %vm1066_vm5, %vm1067_vm4 }
 0xdbe   :  { %v1062_v23 = vmul.f32 %v1589_v21, %v1061_v22 }
 0xdc0   :  { %v1063_v24 = vmul.f32 0.5, %v1062_v23 }
 0xdc2   :  { %v1064_v25 = vsub.f32 1.5, %v1063_v24 }
 0xdc4   :  { %v1065_v26 = vmul.f32 %v1589_v21, %v1064_v25 }
 0xdc6   :  { %v1069_v27 = vsel %vm1068_vm2, %v1589_v21, %v1065_v26 }
 0xdc7   :  { %v1070_v28 = vmul.f32 %v1069_v27, %v1748_v46 }
 0xdc9   :  { %v1071_v29 = vmul.f32 %v1070_v28, %v1051_v14 }
 0xdcb   :  { %1073 = vrot.lane.b32.xlu2 %v1071_v29, %s1597_s0 }
 0xdd3   :  { %1079 = vperm.xlu2 %1562, %v1070_v28  }
 0xddb   :  { %1563 = vset.pattern.permute.xlu2 %v1610_v30 }
 0xe25   :  { %v1074_v31 = vpop.permute.xlu2 %1073 }
 0xe26   :  { %v1076_v32 = vsub.f32 %v1748_v46, %v1074_v31 }
 0xe28   :  { %1085 = vperm.xlu2 %1563, %v1076_v32  }
 0xe2d   :  { %v1080_v33 = vpop.permute.xlu2 %1079 }
 0xe2e   :  { %v1082_v35 = vmul.f32 %v1080_v33, %v1044_v6 }
 0xe30   :  { %1570 = vset.pattern.permute.xlu2 %v1596_v34  ;;  %v1096_v34 = vld [vmem:[%s2182_s3 + $0x70] sm:$0xff] }
 0xe82   :  { %v1086_v36 = vpop.permute.xlu2 %1085 }
 0xe83   :  { %v1088_v37 = vadd.f32 %v1086_v36, %v1082_v35 }
 0xe85   :  { %v1089_v38 = vmax.f32 %v1088_v37, 0.0  ;;  %v1197_v37 = vld [vmem:[%s2186_s7 + $0x40] sm:$0xff] }
 0xe87   :  { %1121 = vmatpush.msrb.mxu1 %v1089_v38  ;;  %v1198_v38 = vld [vmem:[%s2186_s7 + $0x48] sm:$0xff] }
 0xe88   :  { %1486 = vmatmul.msk.f32.vlgmr.msrb.gmra.mxu1 %vm374_vm12, %v1094_v39  ;;  %v1384_v39 = vld [vmem:[%s2185_s8 + $0x8] sm:$0x7] }
 0xe90   :  { %1487 = vmatmul.msk.f32.gmra.mxu1 %vm374_vm12, %v1095_v40 }
 0xe98   :  { %1488 = vmatmul.msk.f32.gmra.mxu1 %vm374_vm12, %v1096_v34  ;;  %vm1142_vm12 = vcmask 121856  }
 0xf05   :  { %v1123_v46 = vpop.f32.mrf.mxu1 }
 0xf06   :  { %1133 = vrot.lane.b32.xlu2 %v1123_v46, %s1599_s24 }
 0xf0d   :  { %v1126_v41 = vpop.f32.mrf.mxu1 }
 0xf0e   :  { %1565 = vrot.lane.b32.xlu2 %v2021_v54, %s1611_s22 }
 0xf15   :  { %v1129_v42 = vpop.f32.mrf.mxu1 }
 0xf16   :  { %1139 = vrot.lane.b32.xlu1 %v1129_v42, %s1590_s30 }
 0xf1e   :  { %1222 = vperm.xlu1 %1569, %v1204_v1  }
 0xf26   :  { %1207 = vperm.xlu1 %1569, %v1201_v56  }
 0xf2e   :  { %1573 = vset.pattern.permute.xlu1 %v1600_v17 }
 0xf2f   :  { %1287 = vperm.xlu1 %1573, %v1203_v59  }
 0xf37   :  { %1575 = vset.pattern.permute.xlu1 %v1603_v11 }
 0xf38   :  { %1349 = vperm.xlu1 %1575, %v1202_v57  }
 0xf40   :  { %1577 = vset.pattern.permute.xlu1 %v1606_v20 }
 0xf41   :  { %1387 = vperm.xlu1 %1577, %v1201_v56  }
 0xf60   :  { %v1134_v43 = vpop.permute.xlu2 %1133 }
 0xf61   :  { %v1136_v51 = vsel %vm471_vm14, 0.0, %v1134_v43  ;;  %vm1266_vm14 = vcmask 15360  }
 0xf62   :  { %v1137_v52 = vmul.f32 %v1485_v50, %v1136_v51 }
 0xf64   :  { %v1144_v53 = vadd.f32 %v1137_v52, %v1126_v41 }
 0xf68   :  { %v1566_v44 = vpop.permute.xlu2 %1565 }
 0xf69   :  { %v1568_v45 = vunpack.i.h.bf16 %v1566_v44  ;;  %v1567_v47 = vunpack.i.l.bf16 %v1566_v44 }
 0xf6b   :  { %1173 = vmatpush.msra.mxu3 %v1567_v47  ;;  %v1199_v47 = vld [vmem:[%s2186_s7 + $0x50] sm:$0xff] }
 0xf6d   :  { %1174 = vmatpush.msra.mxu3 %v1568_v45 }
 0xf88   :  { %v1140_v54 = vpop.permute.xlu1 %1139 }
 0xf89   :  { %v1143_v55 = vsel %vm1142_vm12, %v1140_v54, 0.0 }
 0xf8a   :  { %v1145_v58 = vadd.f32 %v1144_v53, %v1143_v55 }
 0xf8c   :  { %1489 = vmatmul.msk.f32.vlgmr.msra.gmra.mxu3 %vm1047_vm3, %v1145_v58 }
 0xf90   :  { %v1223_v63 = vpop.permute.xlu1 %1222 }
 0xf98   :  { %v1208_v4 = vpop.permute.xlu1 %1207 }
 0xfa1   :  { %v1288_v24 = vpop.permute.xlu1 %1287 }
 0xfaa   :  { %v1350_v46 = vpop.permute.xlu1 %1349 }
 0xfb3   :  { %v1388_v50 = vpop.permute.xlu1 %1387 }
0x100f   :  { %v1176_v48 = vpop.f32.mrf.mxu3 }
0x1010   :  { %1183 = vrot.lane.b32.xlu0 %v1176_v48, %s1593_s12  ;;  %1186 = vrot.lane.b32.xlu2 %v1176_v48, %s1595_s14 }
0x1018   :  { %1180 = vrot.lane.b32.xlu2 %v1176_v48, %s1591_s2  ;;  %1212 = vperm.xlu0 %1571, %v1202_v57  }
0x1020   :  { %1217 = vperm.xlu2 %1570, %v1203_v59   ;;  %1574 = vset.pattern.permute.xlu0 %v1600_v17 }
0x1021   :  { %1277 = vperm.xlu0 %1574, %v1201_v56  }
0x1028   :  { %1572 = vset.pattern.permute.xlu2 %v1600_v17  ;;  %v1191_v17 = vld [vmem:[%s2186_s7 + $0x10] sm:$0xff] }
0x1029   :  { %1292 = vperm.xlu2 %1572, %v1204_v1   ;;  %1579 = vset.pattern.permute.xlu0 %v1606_v20 }
0x1031   :  { %1282 = vperm.xlu2 %1572, %v1202_v57  }
0x1039   :  { %1576 = vset.pattern.permute.xlu2 %v1603_v11 }
0x103a   :  { %1344 = vperm.xlu2 %1576, %v1201_v56  }
0x1042   :  { %1578 = vset.pattern.permute.xlu2 %v1606_v20 }
0x1043   :  { %1392 = vperm.xlu2 %1578, %v1384_v39  }
0x106a   :  { %v1187_v3 = vpop.permute.xlu2 %1186 }
0x106b   :  { %1249 = vmatpush.msra.mxu0 %v1187_v3 }
0x1072   :  { %v1181_v61 = vpop.permute.xlu2 %1180 }
0x107a   :  { %v1218_v10 = vpop.permute.xlu2 %1217 }
0x1082   :  { %v1184_v60 = vpop.permute.xlu0 %1183 }
0x1083   :  { %1250 = vmatpush.msra.mxu0 %v1184_v60  ;;  %v1293_v22 = vpop.permute.xlu2 %1292 }
0x1085   :  { %1251 = vmatpush.msra.mxu0 %v1181_v61 }
0x1087   :  { %1252 = vmatpush.msra.mxu0 %v1176_v48 }
0x1088   :  { %1490 = vmatmul.msk.f32.vlgmr.msra.gmra.mxu0 %vm905_vm10, %v1189_v0 }
0x108a   :  { %v1213_v11 = vpop.permute.xlu0 %1212 }
0x108b   :  { %v1283_v25 = vpop.permute.xlu2 %1282 }
0x1090   :  { %1491 = vmatmul.msk.f32.gmra.mxu0 %vm905_vm10, %v1190_v2 }
0x1093   :  { %v1278_v29 = vpop.permute.xlu0 %1277 }
0x1094   :  { %v1345_v34 = vpop.permute.xlu2 %1344 }
0x1098   :  { %1492 = vmatmul.msk.f32.gmra.mxu0 %vm905_vm10, %v1191_v17 }
0x109d   :  { %v1393_v53 = vpop.permute.xlu2 %1392 }
0x10a0   :  { %1493 = vmatmul.msk.f32.gmra.mxu0 %vm905_vm10, %v1192_v62 }
0x1105   :  { %v1254_v5 = vpop.f32.mrf.mxu0 }
0x1106   :  { %v1255_v6 = vadd.f32 %v1254_v5, %v1208_v4 }
0x1108   :  { %1267 = vst.msk [vmem:[%s2187_s10] sm:$0xff] %vm1266_vm14, %v1255_v6 }
0x110d   :  { %v1257_v7 = vpop.f32.mrf.mxu0 }
0x110e   :  { %v1258_v9 = vadd.f32 %v1257_v7, %v1213_v11 }
0x1110   :  { %1268 = vst.msk [vmem:[%s2187_s10 + $0x8] sm:$0xff] %vm1266_vm14, %v1258_v9 }
0x1115   :  { %v1260_v20 = vpop.f32.mrf.mxu0 }
0x1116   :  { %v1261_v12 = vadd.f32 %v1260_v20, %v1218_v10 }
0x1118   :  { %1269 = vst.msk [vmem:[%s2187_s10 + $0x10] sm:$0xff] %vm1266_vm14, %v1261_v12 }
0x111d   :  { %v1263_v13 = vpop.f32.mrf.mxu0 }
0x111e   :  { %v1264_v14 = vadd.f32 %v1263_v13, %v1223_v63 }
0x1120   :  { %1270 = vst.msk [vmem:[%s2187_s10 + $0x18] sm:$0xff] %vm1266_vm14, %v1264_v14  ;;  %1319 = vmatpush.msrb.mxu3 %v1264_v14 }
0x1122   :  { %1320 = vmatpush.msrb.mxu3 %v1261_v12 }
0x1124   :  { %1321 = vmatpush.msrb.mxu3 %v1258_v9 }
0x1126   :  { %1322 = vmatpush.msrb.mxu3 %v1255_v6 }
0x1127   :  { %1494 = vmatmul.msk.f32.vlgmr.msrb.gmra.mxu3 %vm905_vm10, %v1193_v15 }
0x112f   :  { %1495 = vmatmul.msk.f32.gmra.mxu3 %vm905_vm10, %v1194_v16 }
0x1137   :  { %1496 = vmatmul.msk.f32.gmra.mxu3 %vm905_vm10, %v1195_v8 }
0x113f   :  { %1497 = vmatmul.msk.f32.gmra.mxu3 %vm905_vm10, %v1196_v18 }
0x11aa   :  { %v1324_v19 = vpop.f32.mrf.mxu3 }
0x11ab   :  { %v1325_v32 = vadd.f32 %v1324_v19, %v1278_v29 }
0x11ad   :  { %v1336_v36 = vmax.f32 %v1325_v32, 0.0 }
0x11b2   :  { %v1327_v21 = vpop.f32.mrf.mxu3 }
0x11b3   :  { %v1328_v30 = vadd.f32 %v1327_v21, %v1283_v25 }
0x11b5   :  { %v1337_v35 = vmax.f32 %v1328_v30, 0.0 }
0x11ba   :  { %v1330_v23 = vpop.f32.mrf.mxu3 }
0x11bb   :  { %v1331_v27 = vadd.f32 %v1330_v23, %v1288_v24 }
0x11bd   :  { %v1338_v33 = vmax.f32 %v1331_v27, 0.0 }
0x11c2   :  { %v1333_v26 = vpop.f32.mrf.mxu3 }
0x11c3   :  { %v1334_v28 = vadd.f32 %v1333_v26, %v1293_v22 }
0x11c5   :  { %v1339_v31 = vmax.f32 %v1334_v28, 0.0 }
0x11c7   :  { %1370 = vmatpush.msra.mxu2 %v1339_v31 }
0x11c9   :  { %1371 = vmatpush.msra.mxu2 %v1338_v33 }
0x11cb   :  { %1372 = vmatpush.msra.mxu2 %v1337_v35 }
0x11cd   :  { %1373 = vmatpush.msra.mxu2 %v1336_v36 }
0x11ce   :  { %1498 = vmatmul.msk.f32.vlgmr.msra.gmra.mxu2 %vm905_vm10, %v1197_v37 }
0x11d6   :  { %1499 = vmatmul.msk.f32.gmra.mxu2 %vm905_vm10, %v1198_v38 }
0x1251   :  { %v1375_v40 = vpop.f32.mrf.mxu2 }
0x1252   :  { %v1376_v42 = vadd.f32 %v1375_v40, %v1345_v34 }
0x1254   :  { %v1381_v45 = vmax.f32 %v1376_v42, 0.0 }
0x1259   :  { %v1378_v41 = vpop.f32.mrf.mxu2 }
0x125a   :  { %v1379_v43 = vadd.f32 %v1378_v41, %v1350_v46 }
0x125c   :  { %v1382_v44 = vmax.f32 %v1379_v43, 0.0 }
0x125e   :  { %1415 = vmatpush.msra.mxu1 %v1382_v44 }
0x1260   :  { %1416 = vmatpush.msra.mxu1 %v1381_v45 }
0x1261   :  { %1500 = vmatmul.msk.f32.vlgmr.msra.gmra.mxu1 %vm1047_vm3, %v1199_v47 }
0x1269   :  { %1501 = vmatmul.msk.f32.gmra.mxu1 %vm1047_vm3, %v1200_v49 }
0x12de   :  { %v1418_v51 = vpop.f32.mrf.mxu1 }
0x12df   :  { %v1419_v52 = vadd.f32 %v1418_v51, %v1388_v50 }
0x12e1   :  { %1424 = vst.msk [vmem:[%s2188_s9] sm:$0xff] %vm1266_vm14, %v1419_v52 }
0x12e6   :  { %v1421_v54 = vpop.f32.mrf.mxu1 }
0x12e7   :  { %v1422_v55 = vadd.f32 %v1421_v54, %v1393_v53 }
0x12e9   :  { %1426 = vst.msk [vmem:[%s2188_s9 + $0x8] sm:$0x7] %vm1425_vm7, %v1422_v55 }

</bundles_post_ra>
